<compile_context>
chip_gen: v7x
topology: tpu7x:2x2x1
jax: 0.10.0
libtpu: 0.0.40
codegen_flags: <defaults>
</compile_context>

<pallas_src>
import functools

import jax
import jax.numpy as jnp
from jax import lax
from jax.experimental import pallas as pl
from jax.experimental.pallas import tpu as pltpu

# squeeze sentinel for the leading batch block dim (None is the long-standing equivalent)
_SQ = pl.Squeezed() if hasattr(pl, "Squeezed") else None


def _vmem_limit_bytes():
    """Generation-aware VMEM cap: ~3/4 of physical (≈96 MiB v5e/v6e, ≈48 MiB v7x)."""
    try:
        cap = int(pltpu.get_tpu_info().vmem_capacity_bytes)
    except Exception:
        cap = 64 * 1024 * 1024                       # conservative (v7x-sized) fallback
    return (cap * 3) // 4


def _supports_bf16_eup():
    """bf16 transcendentals (EUP) exist on v6e/v7x but not on v2-v5."""
    try:
        kind = jax.devices()[0].device_kind.lower()
    except Exception:
        return False
    return not any(t in kind for t in ("v2", "v3", "v4", "v5"))


def _tile(n, target, align):
    """Largest divisor of n that is <= target and a multiple of `align`; else n (full dim)."""
    if n <= target:
        return n
    t = min(target, n)
    t -= t % align
    while t >= align:
        if n % t == 0:
            return t
        t -= align
    return n


def _resident_attention_fits(HW, Cp, tq, vmem_limit):
    """Rough VMEM budget for the full-KV-resident attention kernel (bytes)."""
    kv_bufs = 2 * 2 * HW * Cp * 2                    # K and V blocks, double-buffered, bf16
    qxo = 2 * tq * Cp * (2 + 4 + 4)                  # q(bf16) + x(f32) + out(f32), double-buffered
    live = tq * HW * (4 + 2) + tq * Cp * 4           # scores f32 + probs bf16 + PV accumulator
    weights = 2 * (Cp * Cp * 2 + Cp * 4)             # wp + bp
    return kv_bufs + qxo + live + weights <= int(vmem_limit * 0.7)


# --------------------------- 1) GroupNorm statistics ---------------------------
def gn_stats_kernel(x_ref, s1_ref, s2_ref):
    """Accumulate per-channel sum and sum-of-squares over HW tiles (f32, VPU reduce)."""
    @pl.when(pl.program_id(1) == 0)
    def _():
        s1_ref[...] = jnp.zeros_like(s1_ref)
        s2_ref[...] = jnp.zeros_like(s2_ref)

    x = x_ref[...]                                        # (thw, Cp) f32
    s1_ref[...] += jnp.sum(x, axis=0, keepdims=True)
    s2_ref[...] += jnp.sum(x * x, axis=0, keepdims=True)


# --------------- 2) GroupNorm apply + fused QKV projection (K pre-transposed) ---------------
def gn_qkv_kernel(x_ref, mean_ref, rstd_ref, gamma_ref, beta_ref,
                  wqkv_ref, bqkv_ref, q_ref, kT_ref, v_ref):
    Cp = x_ref.shape[-1]
    scale = rstd_ref[...] * gamma_ref[...]                # (1, Cp)
    shift = beta_ref[...] - mean_ref[...] * scale         # (1, Cp)
    h = (x_ref[...] * scale + shift).astype(jnp.bfloat16)  # bf16 MXU input
    qkv = jnp.dot(h, wqkv_ref[...], preferred_element_type=jnp.float32) + bqkv_ref[...]
    # 1/sqrt(C) is folded into the q columns of wqkv and bq; the ones-column for the softmax
    # row-sum trick is folded into the v bias (padded lane) in the wrapper.
    q_ref[...] = qkv[:, :Cp].astype(jnp.bfloat16)
    kT_ref[...] = qkv[:, Cp:2 * Cp].T.astype(jnp.bfloat16)   # one transpose per token tile
    v_ref[...] = qkv[:, 2 * Cp:].astype(jnp.bfloat16)


# --------- 3a) full-KV-resident attention + output projection + residual ---------
def attn_resident_kernel(q_ref, kT_ref, v_ref, x_ref, wp_ref, bp_ref, out_ref,
                         *, ones_col, use_bf16_exp):
    s = jnp.dot(q_ref[...], kT_ref[...], preferred_element_type=jnp.float32)   # (tq, HW)
    m = jnp.max(s, axis=-1, keepdims=True)
    d = s - m
    p = jnp.exp(d.astype(jnp.bfloat16)) if use_bf16_exp else jnp.exp(d)
    acc = jnp.dot(p.astype(jnp.bfloat16), v_ref[...], preferred_element_type=jnp.float32)
    if ones_col is not None:
        l = acc[:, ones_col:ones_col + 1]                 # row-sum came out of the MXU
    else:
        l = jnp.sum(p.astype(jnp.float32), axis=-1, keepdims=True)
    ho = (acc * pl.reciprocal(l)).astype(jnp.bfloat16)    # exact reciprocal, once per q tile
    proj = jnp.dot(ho, wp_ref[...], preferred_element_type=jnp.float32) + bp_ref[...]
    out_ref[...] = x_ref[...] + proj                      # residual in f32


# --------- 3b) flash attention over KV tiles + output projection + residual ---------
def attn_flash_kernel(q_ref, kT_ref, v_ref, x_ref, wp_ref, bp_ref, out_ref,
                      m_sc, l_sc, acc_sc, *, ones_col, use_bf16_exp):
    kv = pl.program_id(2)

    @pl.when(kv == 0)
    def _():
        m_sc[...] = jnp.full_like(m_sc, -jnp.inf)
        acc_sc[...] = jnp.zeros_like(acc_sc)
        if ones_col is None:
            l_sc[...] = jnp.zeros_like(l_sc)

    s = jnp.dot(q_ref[...], kT_ref[...], preferred_element_type=jnp.float32)   # (tq, tkv)
    m_prev = m_sc[...]
    m_new = jnp.maximum(m_prev, jnp.max(s, axis=-1, keepdims=True))
    alpha = jnp.exp(m_prev - m_new)
    d = s - m_new
    p = jnp.exp(d.astype(jnp.bfloat16)) if use_bf16_exp else jnp.exp(d)
    acc_sc[...] = alpha * acc_sc[...] + jnp.dot(
        p.astype(jnp.bfloat16), v_ref[...], preferred_element_type=jnp.float32)
    if ones_col is None:
        l_sc[...] = alpha * l_sc[...] + jnp.sum(p.astype(jnp.float32), axis=-1, keepdims=True)
    m_sc[...] = m_new

    @pl.when(kv == pl.num_programs(2) - 1)
    def _():
        acc = acc_sc[...]
        l = acc[:, ones_col:ones_col + 1] if ones_col is not None else l_sc[...]
        ho = (acc * pl.reciprocal(l)).astype(jnp.bfloat16)
        proj = jnp.dot(ho, wp_ref[...], preferred_element_type=jnp.float32) + bp_ref[...]
        out_ref[...] = x_ref[...] + proj


def make_params(key, in_ch):
    """Deterministic init matching AttnBlock.initialize(): xavier_uniform for q/k/v,
    xavier_uniform(gain=1e-5) for proj, zero biases, GroupNorm affine weight=1 / bias=0."""
    kq, kk, kv, kp = jax.random.split(key, 4)
    bound = (6.0 / (in_ch + in_ch)) ** 0.5                # fan_in = fan_out = in_ch (1x1 conv)

    def xavier(k, gain):
        return jax.random.uniform(k, (in_ch, in_ch), jnp.float32,
                                  minval=-gain * bound, maxval=gain * bound)

    return dict(
        wq=xavier(kq, 1.0), wk=xavier(kk, 1.0), wv=xavier(kv, 1.0),
        wp=xavier(kp, 1e-5),
        bq=jnp.zeros((in_ch,), jnp.float32), bk=jnp.zeros((in_ch,), jnp.float32),
        bv=jnp.zeros((in_ch,), jnp.float32), bp=jnp.zeros((in_ch,), jnp.float32),
        gamma=jnp.ones((in_ch,), jnp.float32), beta=jnp.zeros((in_ch,), jnp.float32),
    )


@functools.partial(jax.jit, static_argnames=("num_groups", "force_flash"))
def attn_block(x_nchw, params, num_groups=32, force_flash=False):
    B, C, H, W = x_nchw.shape
    HW = H * W
    g = C // num_groups

    Cp = max(128, ((C + 127) // 128) * 128)   # lane-dense channel padding
    c_pad = Cp - C
    ones_col = C if c_pad > 0 else None       # spare padded V lane used for the row-sum fold

    vmem_limit = _vmem_limit_bytes()
    use_bf16_exp = _supports_bf16_eup()

    # NCHW -> (B, HW, Cp) tokens-major, zero-padded channels (layout plumbing outside kernels)
    x3 = jnp.transpose(x_nchw, (0, 2, 3, 1)).reshape(B, HW, C).astype(jnp.float32)
    if c_pad:
        x3 = jnp.pad(x3, ((0, 0), (0, 0), (0, c_pad)))

    # Weights: pre-transpose for h @ W.T, fold 1/sqrt(C) into wq/bq, pad to Cp, fuse q|k|v.
    c_scale = float(C) ** -0.5

    def padw(w):
        return jnp.pad(w, ((0, c_pad), (0, c_pad))) if c_pad else w

    def padb(b):
        return jnp.pad(b, ((0, c_pad),)) if c_pad else b

    wq = padw(params["wq"].T * c_scale)
    wk = padw(params["wk"].T)
    wv = padw(params["wv"].T)
    w_qkv = jnp.concatenate([wq, wk, wv], axis=1).astype(jnp.bfloat16)       # (Cp, 3Cp)

    bq = padb(params["bq"] * c_scale)
    bk = padb(params["bk"])
    bv = padb(params["bv"])
    if ones_col is not None:
        bv = bv.at[ones_col].set(1.0)         # v[:, ones_col] == 1 -> softmax row-sum via MXU
    b_qkv = jnp.concatenate([bq, bk, bv]).reshape(1, 3 * Cp).astype(jnp.float32)

    wp_t = padw(params["wp"].T).astype(jnp.bfloat16)                          # (Cp, Cp)
    bp = padb(params["bp"]).reshape(1, Cp).astype(jnp.float32)
    gamma = padb(params["gamma"]).reshape(1, Cp).astype(jnp.float32)
    beta = padb(params["beta"]).reshape(1, Cp).astype(jnp.float32)

    # Tile sizes (thw multiple of 128 because it is the lane dim of the pre-transposed K tile).
    thw = _tile(HW, 1024, 128)
    tq = _tile(HW, 512, 16)
    tkv = _tile(HW, 2048 if Cp <= 512 else 1024, 128)

    # ---------------- 1) GroupNorm statistics (tiled reduction over HW) ----------------
    s1, s2 = pl.pallas_call(
        gn_stats_kernel,
        out_shape=(jax.ShapeDtypeStruct((B, 1, Cp), jnp.float32),
                   jax.ShapeDtypeStruct((B, 1, Cp), jnp.float32)),
        grid_spec=pltpu.PrefetchScalarGridSpec(
            num_scalar_prefetch=0,
            grid=(B, HW // thw),
            in_specs=[pl.BlockSpec((_SQ, thw, Cp), lambda b, t: (b, t, 0))],
            out_specs=(pl.BlockSpec((_SQ, 1, Cp), lambda b, t: (b, 0, 0)),
                       pl.BlockSpec((_SQ, 1, Cp), lambda b, t: (b, 0, 0)))),
        compiler_params=pltpu.CompilerParams(
            dimension_semantics=("parallel", "arbitrary"),
            vmem_limit_bytes=vmem_limit),
    )(x3)

    # Tiny (B, C)-sized per-group fold/broadcast kept in plain JAX (a few KB of work).
    # NOTE: var = E[x^2] - E[x]^2 in f32 (single pass), guarded by eps.
    n_per_group = float(HW * g)
    mean_g = s1[..., :C].reshape(B, num_groups, g).sum(-1) / n_per_group     # (B, G)
    msq_g = s2[..., :C].reshape(B, num_groups, g).sum(-1) / n_per_group
    rstd_g = lax.rsqrt(msq_g - mean_g * mean_g + 1e-5)
    mean_c = jnp.repeat(mean_g, g, axis=1).reshape(B, 1, C)
    rstd_c = jnp.repeat(rstd_g, g, axis=1).reshape(B, 1, C)
    if c_pad:
        mean_c = jnp.pad(mean_c, ((0, 0), (0, 0), (0, c_pad)))
        rstd_c = jnp.pad(rstd_c, ((0, 0), (0, 0), (0, c_pad)))

    # ---------------- 2) GroupNorm apply + fused QKV projection (K pre-transposed) ----------------
    q, kT, v = pl.pallas_call(
        gn_qkv_kernel,
        out_shape=(jax.ShapeDtypeStruct((B, HW, Cp), jnp.bfloat16),
                   jax.ShapeDtypeStruct((B, Cp, HW), jnp.bfloat16),
                   jax.ShapeDtypeStruct((B, HW, Cp), jnp.bfloat16)),
        grid_spec=pltpu.PrefetchScalarGridSpec(
            num_scalar_prefetch=0,
            grid=(B, HW // thw),
            in_specs=[
                pl.BlockSpec((_SQ, thw, Cp), lambda b, t: (b, t, 0)),      # x
                pl.BlockSpec((_SQ, 1, Cp), lambda b, t: (b, 0, 0)),        # mean
                pl.BlockSpec((_SQ, 1, Cp), lambda b, t: (b, 0, 0)),        # rstd
                pl.BlockSpec((1, Cp), lambda b, t: (0, 0)),                # gamma
                pl.BlockSpec((1, Cp), lambda b, t: (0, 0)),                # beta
                pl.BlockSpec((Cp, 3 * Cp), lambda b, t: (0, 0)),           # w_qkv
                pl.BlockSpec((1, 3 * Cp), lambda b, t: (0, 0)),            # b_qkv
            ],
            out_specs=(pl.BlockSpec((_SQ, thw, Cp), lambda b, t: (b, t, 0)),   # q
                       pl.BlockSpec((_SQ, Cp, thw), lambda b, t: (b, 0, t)),   # k (transposed)
                       pl.BlockSpec((_SQ, thw, Cp), lambda b, t: (b, t, 0)))), # v
        compiler_params=pltpu.CompilerParams(
            dimension_semantics=("parallel", "parallel"),
            vmem_limit_bytes=vmem_limit),
    )(x3, mean_c, rstd_c, gamma, beta, w_qkv, b_qkv)

    # -------- 3) attention + output projection + residual --------
    resident = (not force_flash) and _resident_attention_fits(HW, Cp, tq, vmem_limit)

    if resident:
        kern = functools.partial(attn_resident_kernel,
                                 ones_col=ones_col, use_bf16_exp=use_bf16_exp)
        out3 = pl.pallas_call(
            kern,
            out_shape=jax.ShapeDtypeStruct((B, HW, Cp), jnp.float32),
            grid_spec=pltpu.PrefetchScalarGridSpec(
                num_scalar_prefetch=0,
                grid=(B, HW // tq),
                in_specs=[
                    pl.BlockSpec((_SQ, tq, Cp), lambda b, qi: (b, qi, 0)),   # q
                    pl.BlockSpec((_SQ, Cp, HW), lambda b, qi: (b, 0, 0)),    # kT (full HW resident)
                    pl.BlockSpec((_SQ, HW, Cp), lambda b, qi: (b, 0, 0)),    # v  (full HW resident)
                    pl.BlockSpec((_SQ, tq, Cp), lambda b, qi: (b, qi, 0)),   # x (residual)
                    pl.BlockSpec((Cp, Cp), lambda b, qi: (0, 0)),            # wp
                    pl.BlockSpec((1, Cp), lambda b, qi: (0, 0)),             # bp
                ],
                out_specs=pl.BlockSpec((_SQ, tq, Cp), lambda b, qi: (b, qi, 0))),
            compiler_params=pltpu.CompilerParams(
                dimension_semantics=("parallel", "parallel"),
                vmem_limit_bytes=vmem_limit),
        )(q, kT, v, x3, wp_t, bp)
    else:
        kern = functools.partial(attn_flash_kernel,
                                 ones_col=ones_col, use_bf16_exp=use_bf16_exp)
        out3 = pl.pallas_call(
            kern,
            out_shape=jax.ShapeDtypeStruct((B, HW, Cp), jnp.float32),
            grid_spec=pltpu.PrefetchScalarGridSpec(
                num_scalar_prefetch=0,
                grid=(B, HW // tq, HW // tkv),
                in_specs=[
                    pl.BlockSpec((_SQ, tq, Cp), lambda b, qi, ki: (b, qi, 0)),   # q
                    pl.BlockSpec((_SQ, Cp, tkv), lambda b, qi, ki: (b, 0, ki)),  # kT
                    pl.BlockSpec((_SQ, tkv, Cp), lambda b, qi, ki: (b, ki, 0)),  # v
                    pl.BlockSpec((_SQ, tq, Cp), lambda b, qi, ki: (b, qi, 0)),   # x (residual)
                    pl.BlockSpec((Cp, Cp), lambda b, qi, ki: (0, 0)),            # wp
                    pl.BlockSpec((1, Cp), lambda b, qi, ki: (0, 0)),             # bp
                ],
                out_specs=pl.BlockSpec((_SQ, tq, Cp), lambda b, qi, ki: (b, qi, 0)),
                scratch_shapes=[pltpu.VMEM((tq, 1), jnp.float32),    # running max
                                pltpu.VMEM((tq, 1), jnp.float32),    # running sum (unused if folded)
                                pltpu.VMEM((tq, Cp), jnp.float32)]), # output accumulator
            compiler_params=pltpu.CompilerParams(
                dimension_semantics=("parallel", "parallel", "arbitrary"),
                vmem_limit_bytes=vmem_limit),
        )(q, kT, v, x3, wp_t, bp)

    # (B, HW, Cp) -> (B, HW, C) -> NCHW
    if c_pad:
        out3 = out3[..., :C]
    return jnp.transpose(out3.reshape(B, H, W, C), (0, 3, 1, 2))


def attn_block_reference(x, params, num_groups=32):
    """Pure-JAX reference mirroring the PyTorch forward pass (NCHW, f32)."""
    B, C, H, W = x.shape
    HW = H * W
    xg = x.reshape(B, num_groups, (C // num_groups) * HW)
    mean = jnp.mean(xg, axis=-1, keepdims=True)
    var = jnp.var(xg, axis=-1, keepdims=True)
    h = ((xg - mean) / jnp.sqrt(var + 1e-5)).reshape(B, C, H, W)
    h = h * params["gamma"][None, :, None, None] + params["beta"][None, :, None, None]
    conv = lambda t, w, b: jnp.einsum("bchw,oc->bohw", t, w) + b[None, :, None, None]
    q = conv(h, params["wq"], params["bq"])
    k = conv(h, params["wk"], params["bk"])
    v = conv(h, params["wv"], params["bv"])
    q = jnp.transpose(q, (0, 2, 3, 1)).reshape(B, HW, C)
    k = k.reshape(B, C, HW)
    w = jnp.einsum("bqc,bck->bqk", q, k) * float(C) ** -0.5
    w = jax.nn.softmax(w, axis=-1)
    v = jnp.transpose(v, (0, 2, 3, 1)).reshape(B, HW, C)
    ho = jnp.einsum("bqk,bkc->bqc", w, v)
    ho = jnp.transpose(ho.reshape(B, H, W, C), (0, 3, 1, 2))
    ho = conv(ho, params["wp"], params["bp"])
    return x + ho


if __name__ == "__main__":
    key = jax.random.PRNGKey(0)
    kx, kp = jax.random.split(key)

    B, C, H, W = 2, 64, 8, 8          # C must be a multiple of 32 (GroupNorm(32, C))
    x = jax.random.normal(kx, (B, C, H, W), jnp.float32)
    params = make_params(kp, C)

    out = jax.block_until_ready(attn_block(x, params))
    ref = attn_block_reference(x, params)
    assert out.shape == x.shape
    assert jnp.allclose(out, ref, rtol=1e-2, atol=1e-2), "mismatch vs reference"

    # With the spec's 1e-5 proj gain the residual dominates the output, so also validate the
    # attention math itself (both the KV-resident and flash-tiled kernels) with a unit-gain proj.
    params_big = dict(params, wp=params["wp"] * 1e5)
    ref_big = attn_block_reference(x, params_big)
    out_big = jax.block_until_ready(attn_block(x, params_big))
    assert jnp.allclose(out_big, ref_big, rtol=1e-1, atol=1e-1), "resident attention mismatch"
    out_big_f = jax.block_until_ready(attn_block(x, params_big, force_flash=True))
    assert jnp.allclose(out_big_f, ref_big, rtol=1e-1, atol=1e-1), "flash attention mismatch"

    print("KERNEL_OK")
</pallas_src>

<mosaic_0001>
module attributes {stable_mosaic.version = 11 : i64} {
  func.func @gn_stats_kernel(%arg0: i32, %arg1: i32, %arg2: memref<1x64x128xf32, #tpu.memory_space<vmem>>, %arg3: memref<1x1x128xf32, #tpu.memory_space<vmem>>, %arg4: memref<1x1x128xf32, #tpu.memory_space<vmem>>) attributes {dimension_semantics = [#tpu.dimension_semantics<parallel>, #tpu.dimension_semantics<arbitrary>], iteration_bounds = array<i64: 2, 1>, scalar_prefetch = 0 : i64, scratch_operands = 0 : i64, tpu.core_type = #tpu.core_type<tc>, window_params = [{transform_indices = @transform_0, window_bounds = array<i64: 1, 64, 128>}, {transform_indices = @transform_1, window_bounds = array<i64: 1, 1, 128>}, {transform_indices = @transform_2, window_bounds = array<i64: 1, 1, 128>}]} {
    %c0_i32 = arith.constant 0 : i32
    %0 = arith.cmpi eq, %arg1, %c0_i32 : i32
    %1 = arith.extui %0 : i1 to i32
    %c0_i32_0 = arith.constant 0 : i32
    %2 = arith.cmpi ne, %1, %c0_i32_0 : i32
    scf.if %2 {
      %cst_16 = arith.constant 0.000000e+00 : f32
      %22 = vector.broadcast %cst_16 : f32 to vector<1x128xf32>
      %c0_17 = arith.constant 0 : index
      %c0_18 = arith.constant 0 : index
      %c0_19 = arith.constant 0 : index
      %23 = vector.load %arg3[%c0_17, %c0_18, %c0_19] : memref<1x1x128xf32, #tpu.memory_space<vmem>>, vector<1x1x128xf32>
      %24 = vector.shape_cast %23 : vector<1x1x128xf32> to vector<1x128xf32>
      %25 = vector.shape_cast %22 : vector<1x128xf32> to vector<1x1x128xf32>
      tpu.vector_store %arg3[%c0_17, %c0_18, %c0_19], %25 {strides = array<i32>} : memref<1x1x128xf32, #tpu.memory_space<vmem>>, vector<1x1x128xf32>,
      %cst_20 = arith.constant 0.000000e+00 : f32
      %26 = vector.broadcast %cst_20 : f32 to vector<1x128xf32>
      %c0_21 = arith.constant 0 : index
      %c0_22 = arith.constant 0 : index
      %c0_23 = arith.constant 0 : index
      %27 = vector.load %arg4[%c0_21, %c0_22, %c0_23] : memref<1x1x128xf32, #tpu.memory_space<vmem>>, vector<1x1x128xf32>
      %28 = vector.shape_cast %27 : vector<1x1x128xf32> to vector<1x128xf32>
      %29 = vector.shape_cast %26 : vector<1x128xf32> to vector<1x1x128xf32>
      tpu.vector_store %arg4[%c0_21, %c0_22, %c0_23], %29 {strides = array<i32>} : memref<1x1x128xf32, #tpu.memory_space<vmem>>, vector<1x1x128xf32>,
    } else {
    }
    %c0 = arith.constant 0 : index
    %c0_1 = arith.constant 0 : index
    %c0_2 = arith.constant 0 : index
    %3 = vector.load %arg2[%c0, %c0_1, %c0_2] : memref<1x64x128xf32, #tpu.memory_space<vmem>>, vector<1x64x128xf32>
    %4 = vector.shape_cast %3 : vector<1x64x128xf32> to vector<64x128xf32>
    %c0_3 = arith.constant 0 : index
    %c0_4 = arith.constant 0 : index
    %c0_5 = arith.constant 0 : index
    %5 = vector.load %arg3[%c0_3, %c0_4, %c0_5] : memref<1x1x128xf32, #tpu.memory_space<vmem>>, vector<1x1x128xf32>
    %6 = vector.shape_cast %5 : vector<1x1x128xf32> to vector<1x128xf32>
    %cst = arith.constant dense<0.000000e+00> : vector<128xf32>
    %7 = vector.multi_reduction <add>, %4, %cst [0] : vector<64x128xf32> to vector<128xf32>
    %8 = vector.shape_cast %7 : vector<128xf32> to vector<1x128xf32>
    %9 = arith.addf %6, %8 : vector<1x128xf32>
    %c0_6 = arith.constant 0 : index
    %c0_7 = arith.constant 0 : index
    %c0_8 = arith.constant 0 : index
    %10 = vector.load %arg3[%c0_6, %c0_7, %c0_8] : memref<1x1x128xf32, #tpu.memory_space<vmem>>, vector<1x1x128xf32>
    %11 = vector.shape_cast %10 : vector<1x1x128xf32> to vector<1x128xf32>
    %12 = vector.shape_cast %9 : vector<1x128xf32> to vector<1x1x128xf32>
    tpu.vector_store %arg3[%c0_6, %c0_7, %c0_8], %12 {strides = array<i32>} : memref<1x1x128xf32, #tpu.memory_space<vmem>>, vector<1x1x128xf32>,
    %c0_9 = arith.constant 0 : index
    %c0_10 = arith.constant 0 : index
    %c0_11 = arith.constant 0 : index
    %13 = vector.load %arg4[%c0_9, %c0_10, %c0_11] : memref<1x1x128xf32, #tpu.memory_space<vmem>>, vector<1x1x128xf32>
    %14 = vector.shape_cast %13 : vector<1x1x128xf32> to vector<1x128xf32>
    %15 = arith.mulf %4, %4 : vector<64x128xf32>
    %cst_12 = arith.constant dense<0.000000e+00> : vector<128xf32>
    %16 = vector.multi_reduction <add>, %15, %cst_12 [0] : vector<64x128xf32> to vector<128xf32>
    %17 = vector.shape_cast %16 : vector<128xf32> to vector<1x128xf32>
    %18 = arith.addf %14, %17 : vector<1x128xf32>
    %c0_13 = arith.constant 0 : index
    %c0_14 = arith.constant 0 : index
    %c0_15 = arith.constant 0 : index
    %19 = vector.load %arg4[%c0_13, %c0_14, %c0_15] : memref<1x1x128xf32, #tpu.memory_space<vmem>>, vector<1x1x128xf32>
    %20 = vector.shape_cast %19 : vector<1x1x128xf32> to vector<1x128xf32>
    %21 = vector.shape_cast %18 : vector<1x128xf32> to vector<1x1x128xf32>
    tpu.vector_store %arg4[%c0_13, %c0_14, %c0_15], %21 {strides = array<i32>} : memref<1x1x128xf32, #tpu.memory_space<vmem>>, vector<1x1x128xf32>,
    return
  }
  func.func @transform_0(%arg0: i32, %arg1: i32) -> (i32, i32, i32) {
    %c0_i32 = arith.constant 0 : i32
    %c0_i32_0 = arith.constant 0 : i32
    return %arg0, %arg1, %c0_i32 : i32, i32, i32
  }
  func.func @transform_1(%arg0: i32, %arg1: i32) -> (i32, i32, i32) {
    %c0_i32 = arith.constant 0 : i32
    %c0_i32_0 = arith.constant 0 : i32
    %c0_i32_1 = arith.constant 0 : i32
    return %arg0, %c0_i32, %c0_i32_0 : i32, i32, i32
  }
  func.func @transform_2(%arg0: i32, %arg1: i32) -> (i32, i32, i32) {
    %c0_i32 = arith.constant 0 : i32
    %c0_i32_0 = arith.constant 0 : i32
    %c0_i32_1 = arith.constant 0 : i32
    return %arg0, %c0_i32, %c0_i32_0 : i32, i32, i32
  }
}

module attributes {stable_mosaic.version = 11 : i64} {
  func.func @attn_resident_kernel(%arg0: i32, %arg1: i32, %arg2: memref<1x64x128xbf16, #tpu.memory_space<vmem>>, %arg3: memref<1x128x64xbf16, #tpu.memory_space<vmem>>, %arg4: memref<1x64x128xbf16, #tpu.memory_space<vmem>>, %arg5: memref<1x64x128xf32, #tpu.memory_space<vmem>>, %arg6: memref<128x128xbf16, #tpu.memory_space<vmem>>, %arg7: memref<1x128xf32, #tpu.memory_space<vmem>>, %arg8: memref<1x64x128xf32, #tpu.memory_space<vmem>>) attributes {dimension_semantics = [#tpu.dimension_semantics<parallel>, #tpu.dimension_semantics<parallel>], iteration_bounds = array<i64: 2, 1>, scalar_prefetch = 0 : i64, scratch_operands = 0 : i64, tpu.core_type = #tpu.core_type<tc>, window_params = [{transform_indices = @transform_0, window_bounds = array<i64: 1, 64, 128>}, {transform_indices = @transform_1, window_bounds = array<i64: 1, 128, 64>}, {transform_indices = @transform_2, window_bounds = array<i64: 1, 64, 128>}, {transform_indices = @transform_3, window_bounds = array<i64: 1, 64, 128>}, {pipeline_mode = #tpu.pipeline_mode<synchronous>, transform_indices = @transform_4, window_bounds = array<i64: 128, 128>}, {pipeline_mode = #tpu.pipeline_mode<synchronous>, transform_indices = @transform_5, window_bounds = array<i64: 1, 128>}, {transform_indices = @transform_6, window_bounds = array<i64: 1, 64, 128>}]} {
    %c0 = arith.constant 0 : index
    %c0_0 = arith.constant 0 : index
    %c0_1 = arith.constant 0 : index
    %0 = vector.load %arg2[%c0, %c0_0, %c0_1] : memref<1x64x128xbf16, #tpu.memory_space<vmem>>, vector<1x64x128xbf16>
    %1 = vector.shape_cast %0 : vector<1x64x128xbf16> to vector<64x128xbf16>
    %c0_2 = arith.constant 0 : index
    %c0_3 = arith.constant 0 : index
    %c0_4 = arith.constant 0 : index
    %2 = vector.load %arg3[%c0_2, %c0_3, %c0_4] : memref<1x128x64xbf16, #tpu.memory_space<vmem>>, vector<1x128x64xbf16>
    %3 = vector.shape_cast %2 : vector<1x128x64xbf16> to vector<128x64xbf16>
    %cst = arith.constant dense<0.000000e+00> : vector<64x64xf32>
    %4 = tpu.matmul %1, %3, %cst {dimension_numbers = #tpu.dot_dimension_numbers<[1], [0], [0], [1], [0, 0, 1, 1], [], []>} : vector<64x128xbf16>, vector<128x64xbf16>, vector<64x64xf32> -> vector<64x64xf32>
    %cst_5 = arith.constant dense<0xFF800000> : vector<64xf32>
    %5 = vector.multi_reduction <maximumf>, %4, %cst_5 [1] : vector<64x64xf32> to vector<64xf32>
    %6 = vector.shape_cast %5 : vector<64xf32> to vector<64x1xf32>
    %7 = vector.broadcast %6 : vector<64x1xf32> to vector<64x64xf32>
    %8 = arith.subf %4, %7 : vector<64x64xf32>
    %9 = arith.truncf %8 : vector<64x64xf32> to vector<64x64xbf16>
    %10 = math.exp %9 : vector<64x64xbf16>
    %c0_6 = arith.constant 0 : index
    %c0_7 = arith.constant 0 : index
    %c0_8 = arith.constant 0 : index
    %11 = vector.load %arg4[%c0_6, %c0_7, %c0_8] : memref<1x64x128xbf16, #tpu.memory_space<vmem>>, vector<1x64x128xbf16>
    %12 = vector.shape_cast %11 : vector<1x64x128xbf16> to vector<64x128xbf16>
    %cst_9 = arith.constant dense<0.000000e+00> : vector<64x128xf32>
    %13 = tpu.matmul %10, %12, %cst_9 {dimension_numbers = #tpu.dot_dimension_numbers<[1], [0], [0], [1], [0, 0, 1, 1], [], []>} : vector<64x64xbf16>, vector<64x128xbf16>, vector<64x128xf32> -> vector<64x128xf32>
    %14 = vector.extract_strided_slice %13 {offsets = [0, 64], sizes = [64, 1], strides = [1, 1]} : vector<64x128xf32> to vector<64x1xf32>
    %15 = tpu.reciprocal %14 : vector<64x1xf32> -> vector<64x1xf32>
    %16 = vector.broadcast %15 : vector<64x1xf32> to vector<64x128xf32>
    %17 = arith.mulf %13, %16 : vector<64x128xf32>
    %18 = arith.truncf %17 : vector<64x128xf32> to vector<64x128xbf16>
    %c0_10 = arith.constant 0 : index
    %c0_11 = arith.constant 0 : index
    %19 = vector.load %arg6[%c0_10, %c0_11] : memref<128x128xbf16, #tpu.memory_space<vmem>>, vector<128x128xbf16>
    %cst_12 = arith.constant dense<0.000000e+00> : vector<64x128xf32>
    %20 = tpu.matmul %18, %19, %cst_12 {dimension_numbers = #tpu.dot_dimension_numbers<[1], [0], [0], [1], [0, 0, 1, 1], [], []>} : vector<64x128xbf16>, vector<128x128xbf16>, vector<64x128xf32> -> vector<64x128xf32>
    %c0_13 = arith.constant 0 : index
    %c0_14 = arith.constant 0 : index
    %21 = vector.load %arg7[%c0_13, %c0_14] : memref<1x128xf32, #tpu.memory_space<vmem>>, vector<1x128xf32>
    %22 = vector.broadcast %21 : vector<1x128xf32> to vector<64x128xf32>
    %23 = arith.addf %20, %22 : vector<64x128xf32>
    %c0_15 = arith.constant 0 : index
    %c0_16 = arith.constant 0 : index
    %c0_17 = arith.constant 0 : index
    %24 = vector.load %arg5[%c0_15, %c0_16, %c0_17] : memref<1x64x128xf32, #tpu.memory_space<vmem>>, vector<1x64x128xf32>
    %25 = vector.shape_cast %24 : vector<1x64x128xf32> to vector<64x128xf32>
    %26 = arith.addf %25, %23 : vector<64x128xf32>
    %c0_18 = arith.constant 0 : index
    %c0_19 = arith.constant 0 : index
    %c0_20 = arith.constant 0 : index
    %27 = vector.load %arg8[%c0_18, %c0_19, %c0_20] : memref<1x64x128xf32, #tpu.memory_space<vmem>>, vector<1x64x128xf32>
    %28 = vector.shape_cast %27 : vector<1x64x128xf32> to vector<64x128xf32>
    %29 = vector.shape_cast %26 : vector<64x128xf32> to vector<1x64x128xf32>
    tpu.vector_store %arg8[%c0_18, %c0_19, %c0_20], %29 {strides = array<i32>} : memref<1x64x128xf32, #tpu.memory_space<vmem>>, vector<1x64x128xf32>,
    return
  }
  func.func @transform_0(%arg0: i32, %arg1: i32) -> (i32, i32, i32) {
    %c0_i32 = arith.constant 0 : i32
    %c0_i32_0 = arith.constant 0 : i32
    return %arg0, %arg1, %c0_i32 : i32, i32, i32
  }
  func.func @transform_1(%arg0: i32, %arg1: i32) -> (i32, i32, i32) {
    %c0_i32 = arith.constant 0 : i32
    %c0_i32_0 = arith.constant 0 : i32
    %c0_i32_1 = arith.constant 0 : i32
    return %arg0, %c0_i32, %c0_i32_0 : i32, i32, i32
  }
  func.func @transform_2(%arg0: i32, %arg1: i32) -> (i32, i32, i32) {
    %c0_i32 = arith.constant 0 : i32
    %c0_i32_0 = arith.constant 0 : i32
    %c0_i32_1 = arith.constant 0 : i32
    return %arg0, %c0_i32, %c0_i32_0 : i32, i32, i32
  }
  func.func @transform_3(%arg0: i32, %arg1: i32) -> (i32, i32, i32) {
    %c0_i32 = arith.constant 0 : i32
    %c0_i32_0 = arith.constant 0 : i32
    return %arg0, %arg1, %c0_i32 : i32, i32, i32
  }
  func.func @transform_4(%arg0: i32, %arg1: i32) -> (i32, i32) {
    %c0_i32 = arith.constant 0 : i32
    %c0_i32_0 = arith.constant 0 : i32
    %c0_i32_1 = arith.constant 0 : i32
    return %c0_i32, %c0_i32_0 : i32, i32
  }
  func.func @transform_5(%arg0: i32, %arg1: i32) -> (i32, i32) {
    %c0_i32 = arith.constant 0 : i32
    %c0_i32_0 = arith.constant 0 : i32
    %c0_i32_1 = arith.constant 0 : i32
    return %c0_i32, %c0_i32_0 : i32, i32
  }
  func.func @transform_6(%arg0: i32, %arg1: i32) -> (i32, i32, i32) {
    %c0_i32 = arith.constant 0 : i32
    %c0_i32_0 = arith.constant 0 : i32
    return %arg0, %arg1, %c0_i32 : i32, i32, i32
  }
}

module attributes {stable_mosaic.version = 11 : i64} {
  func.func @gn_qkv_kernel(%arg0: i32, %arg1: i32, %arg2: memref<1x64x128xf32, #tpu.memory_space<vmem>>, %arg3: memref<1x1x128xf32, #tpu.memory_space<vmem>>, %arg4: memref<1x1x128xf32, #tpu.memory_space<vmem>>, %arg5: memref<1x128xf32, #tpu.memory_space<vmem>>, %arg6: memref<1x128xf32, #tpu.memory_space<vmem>>, %arg7: memref<128x384xbf16, #tpu.memory_space<vmem>>, %arg8: memref<1x384xf32, #tpu.memory_space<vmem>>, %arg9: memref<1x64x128xbf16, #tpu.memory_space<vmem>>, %arg10: memref<1x128x64xbf16, #tpu.memory_space<vmem>>, %arg11: memref<1x64x128xbf16, #tpu.memory_space<vmem>>) attributes {dimension_semantics = [#tpu.dimension_semantics<parallel>, #tpu.dimension_semantics<parallel>], iteration_bounds = array<i64: 2, 1>, scalar_prefetch = 0 : i64, scratch_operands = 0 : i64, tpu.core_type = #tpu.core_type<tc>, window_params = [{transform_indices = @transform_0, window_bounds = array<i64: 1, 64, 128>}, {transform_indices = @transform_1, window_bounds = array<i64: 1, 1, 128>}, {transform_indices = @transform_2, window_bounds = array<i64: 1, 1, 128>}, {pipeline_mode = #tpu.pipeline_mode<synchronous>, transform_indices = @transform_3, window_bounds = array<i64: 1, 128>}, {pipeline_mode = #tpu.pipeline_mode<synchronous>, transform_indices = @transform_4, window_bounds = array<i64: 1, 128>}, {pipeline_mode = #tpu.pipeline_mode<synchronous>, transform_indices = @transform_5, window_bounds = array<i64: 128, 384>}, {pipeline_mode = #tpu.pipeline_mode<synchronous>, transform_indices = @transform_6, window_bounds = array<i64: 1, 384>}, {transform_indices = @transform_7, window_bounds = array<i64: 1, 64, 128>}, {transform_indices = @transform_8, window_bounds = array<i64: 1, 128, 64>}, {transform_indices = @transform_9, window_bounds = array<i64: 1, 64, 128>}]} {
    %c0 = arith.constant 0 : index
    %c0_0 = arith.constant 0 : index
    %c0_1 = arith.constant 0 : index
    %0 = vector.load %arg4[%c0, %c0_0, %c0_1] : memref<1x1x128xf32, #tpu.memory_space<vmem>>, vector<1x1x128xf32>
    %1 = vector.shape_cast %0 : vector<1x1x128xf32> to vector<1x128xf32>
    %c0_2 = arith.constant 0 : index
    %c0_3 = arith.constant 0 : index
    %2 = vector.load %arg5[%c0_2, %c0_3] : memref<1x128xf32, #tpu.memory_space<vmem>>, vector<1x128xf32>
    %3 = arith.mulf %1, %2 : vector<1x128xf32>
    %c0_4 = arith.constant 0 : index
    %c0_5 = arith.constant 0 : index
    %4 = vector.load %arg6[%c0_4, %c0_5] : memref<1x128xf32, #tpu.memory_space<vmem>>, vector<1x128xf32>
    %c0_6 = arith.constant 0 : index
    %c0_7 = arith.constant 0 : index
    %c0_8 = arith.constant 0 : index
    %5 = vector.load %arg3[%c0_6, %c0_7, %c0_8] : memref<1x1x128xf32, #tpu.memory_space<vmem>>, vector<1x1x128xf32>
    %6 = vector.shape_cast %5 : vector<1x1x128xf32> to vector<1x128xf32>
    %7 = arith.mulf %6, %3 : vector<1x128xf32>
    %8 = arith.subf %4, %7 : vector<1x128xf32>
    %c0_9 = arith.constant 0 : index
    %c0_10 = arith.constant 0 : index
    %c0_11 = arith.constant 0 : index
    %9 = vector.load %arg2[%c0_9, %c0_10, %c0_11] : memref<1x64x128xf32, #tpu.memory_space<vmem>>, vector<1x64x128xf32>
    %10 = vector.shape_cast %9 : vector<1x64x128xf32> to vector<64x128xf32>
    %11 = vector.broadcast %3 : vector<1x128xf32> to vector<64x128xf32>
    %12 = arith.mulf %10, %11 : vector<64x128xf32>
    %13 = vector.broadcast %8 : vector<1x128xf32> to vector<64x128xf32>
    %14 = arith.addf %12, %13 : vector<64x128xf32>
    %15 = arith.truncf %14 : vector<64x128xf32> to vector<64x128xbf16>
    %c0_12 = arith.constant 0 : index
    %c0_13 = arith.constant 0 : index
    %16 = vector.load %arg7[%c0_12, %c0_13] : memref<128x384xbf16, #tpu.memory_space<vmem>>, vector<128x384xbf16>
    %cst = arith.constant dense<0.000000e+00> : vector<64x384xf32>
    %17 = tpu.matmul %15, %16, %cst {dimension_numbers = #tpu.dot_dimension_numbers<[1], [0], [0], [1], [0, 0, 1, 1], [], []>} : vector<64x128xbf16>, vector<128x384xbf16>, vector<64x384xf32> -> vector<64x384xf32>
    %c0_14 = arith.constant 0 : index
    %c0_15 = arith.constant 0 : index
    %18 = vector.load %arg8[%c0_14, %c0_15] : memref<1x384xf32, #tpu.memory_space<vmem>>, vector<1x384xf32>
    %19 = vector.broadcast %18 : vector<1x384xf32> to vector<64x384xf32>
    %20 = arith.addf %17, %19 : vector<64x384xf32>
    %21 = vector.extract_strided_slice %20 {offsets = [0, 0], sizes = [64, 128], strides = [1, 1]} : vector<64x384xf32> to vector<64x128xf32>
    %22 = arith.truncf %21 : vector<64x128xf32> to vector<64x128xbf16>
    %c0_16 = arith.constant 0 : index
    %c0_17 = arith.constant 0 : index
    %c0_18 = arith.constant 0 : index
    %23 = vector.load %arg9[%c0_16, %c0_17, %c0_18] : memref<1x64x128xbf16, #tpu.memory_space<vmem>>, vector<1x64x128xbf16>
    %24 = vector.shape_cast %23 : vector<1x64x128xbf16> to vector<64x128xbf16>
    %25 = vector.shape_cast %22 : vector<64x128xbf16> to vector<1x64x128xbf16>
    tpu.vector_store %arg9[%c0_16, %c0_17, %c0_18], %25 {strides = array<i32>} : memref<1x64x128xbf16, #tpu.memory_space<vmem>>, vector<1x64x128xbf16>,
    %26 = vector.extract_strided_slice %20 {offsets = [0, 128], sizes = [64, 128], strides = [1, 1]} : vector<64x384xf32> to vector<64x128xf32>
    %27 = tpu.transpose %26, [1, 0] : vector<64x128xf32> -> vector<128x64xf32>
    %28 = arith.truncf %27 : vector<128x64xf32> to vector<128x64xbf16>
    %c0_19 = arith.constant 0 : index
    %c0_20 = arith.constant 0 : index
    %c0_21 = arith.constant 0 : index
    %29 = vector.load %arg10[%c0_19, %c0_20, %c0_21] : memref<1x128x64xbf16, #tpu.memory_space<vmem>>, vector<1x128x64xbf16>
    %30 = vector.shape_cast %29 : vector<1x128x64xbf16> to vector<128x64xbf16>
    %31 = vector.shape_cast %28 : vector<128x64xbf16> to vector<1x128x64xbf16>
    tpu.vector_store %arg10[%c0_19, %c0_20, %c0_21], %31 {strides = array<i32>} : memref<1x128x64xbf16, #tpu.memory_space<vmem>>, vector<1x128x64xbf16>,
    %32 = vector.extract_strided_slice %20 {offsets = [0, 256], sizes = [64, 128], strides = [1, 1]} : vector<64x384xf32> to vector<64x128xf32>
    %33 = arith.truncf %32 : vector<64x128xf32> to vector<64x128xbf16>
    %c0_22 = arith.constant 0 : index
    %c0_23 = arith.constant 0 : index
    %c0_24 = arith.constant 0 : index
    %34 = vector.load %arg11[%c0_22, %c0_23, %c0_24] : memref<1x64x128xbf16, #tpu.memory_space<vmem>>, vector<1x64x128xbf16>
    %35 = vector.shape_cast %34 : vector<1x64x128xbf16> to vector<64x128xbf16>
    %36 = vector.shape_cast %33 : vector<64x128xbf16> to vector<1x64x128xbf16>
    tpu.vector_store %arg11[%c0_22, %c0_23, %c0_24], %36 {strides = array<i32>} : memref<1x64x128xbf16, #tpu.memory_space<vmem>>, vector<1x64x128xbf16>,
    return
  }
  func.func @transform_0(%arg0: i32, %arg1: i32) -> (i32, i32, i32) {
    %c0_i32 = arith.constant 0 : i32
    %c0_i32_0 = arith.constant 0 : i32
    return %arg0, %arg1, %c0_i32 : i32, i32, i32
  }
  func.func @transform_1(%arg0: i32, %arg1: i32) -> (i32, i32, i32) {
    %c0_i32 = arith.constant 0 : i32
    %c0_i32_0 = arith.constant 0 : i32
    %c0_i32_1 = arith.constant 0 : i32
    return %arg0, %c0_i32, %c0_i32_0 : i32, i32, i32
  }
  func.func @transform_2(%arg0: i32, %arg1: i32) -> (i32, i32, i32) {
    %c0_i32 = arith.constant 0 : i32
    %c0_i32_0 = arith.constant 0 : i32
    %c0_i32_1 = arith.constant 0 : i32
    return %arg0, %c0_i32, %c0_i32_0 : i32, i32, i32
  }
  func.func @transform_3(%arg0: i32, %arg1: i32) -> (i32, i32) {
    %c0_i32 = arith.constant 0 : i32
    %c0_i32_0 = arith.constant 0 : i32
    %c0_i32_1 = arith.constant 0 : i32
    return %c0_i32, %c0_i32_0 : i32, i32
  }
  func.func @transform_4(%arg0: i32, %arg1: i32) -> (i32, i32) {
    %c0_i32 = arith.constant 0 : i32
    %c0_i32_0 = arith.constant 0 : i32
    %c0_i32_1 = arith.constant 0 : i32
    return %c0_i32, %c0_i32_0 : i32, i32
  }
  func.func @transform_5(%arg0: i32, %arg1: i32) -> (i32, i32) {
    %c0_i32 = arith.constant 0 : i32
    %c0_i32_0 = arith.constant 0 : i32
    %c0_i32_1 = arith.constant 0 : i32
    return %c0_i32, %c0_i32_0 : i32, i32
  }
  func.func @transform_6(%arg0: i32, %arg1: i32) -> (i32, i32) {
    %c0_i32 = arith.constant 0 : i32
    %c0_i32_0 = arith.constant 0 : i32
    %c0_i32_1 = arith.constant 0 : i32
    return %c0_i32, %c0_i32_0 : i32, i32
  }
  func.func @transform_7(%arg0: i32, %arg1: i32) -> (i32, i32, i32) {
    %c0_i32 = arith.constant 0 : i32
    %c0_i32_0 = arith.constant 0 : i32
    return %arg0, %arg1, %c0_i32 : i32, i32, i32
  }
  func.func @transform_8(%arg0: i32, %arg1: i32) -> (i32, i32, i32) {
    %c0_i32 = arith.constant 0 : i32
    %c0_i32_0 = arith.constant 0 : i32
    return %arg0, %c0_i32, %arg1 : i32, i32, i32
  }
  func.func @transform_9(%arg0: i32, %arg1: i32) -> (i32, i32, i32) {
    %c0_i32 = arith.constant 0 : i32
    %c0_i32_0 = arith.constant 0 : i32
    return %arg0, %arg1, %c0_i32 : i32, i32, i32
  }
}

</mosaic_0001>

<bundles_post_ra>
// kernel: attn_block.3
= control target key start
LH: loop header
LB: loop body
LE: loop exit
PB: predicated region body
PF: predicated region fallthrough
CT: control target
= control target key end

     0   :  { %s392_s9 = smov 0   ;;  %s394_s10 = smov 0   ;;  %s438_s0 = inlined_call_operand.vmem [shape: f32[2,64,128], index: 0, kind: input, shape index: {}]   ;;  %s439_s1 = inlined_call_operand.vmem [shape: f32[2,1,128], index: 1, kind: output, shape index: {0}]   ;;  %s440_s2 = inlined_call_operand.vmem [shape: f32[2,1,128], index: 2, kind: output, shape index: {1}]  }
   0x1   :  { %s396_s11 = smov 0  }
   0x2 LB: > { %s25_s12 = sadd.s32 1, %s370_s10  ;;  %p321_p0 = scmp.ge.s32.totalorder %s374_s11, 1  ;;  %s374_s11 = sphi %s396_s11, %s13_s11   ;;  %s370_s10 = sphi %s394_s10, %s442_s10   ;;  %s366_s9 = sphi %s392_s9, %s441_s9  }
   0x3   : > { %p27_p1 = scmp.ge.s32.totalorder %s25_s12, 2  ;;  %p134_p2 = scmp.lt.s32.totalorder %s374_s11, 3 }
   0x5   : > { %s444_s12 = smov (%p27_p1, %s25_s12), 0  ;;  %p135_p3 = pnand %p321_p0, %p134_p2 }
   0x6   : > { %p162_p4 = scmp.lt.s32.totalorder (!%p135_p3), %s366_s9, 1  ;;  %v376_v0 = vmov (!%p135_p3), 0.0  }
   0x7   : > { %138 = sbr.rel (%p135_p3) target bundleno = 49 (0x31), region = 24 }
   0xe   : > { %s446_s9 = smov (!%p162_p4, %s366_s9), 1 }
   0xf   : > { %s326_s13 = sshll.u32 %s446_s9, 6  ;;  %s413_s16 = scalar_lea.vmem %s439_s1, %s446_s9 }
  0x10   : > { %s169_s19 = scalar_lea.vmem %s438_s0, %s326_s13  ;;  %181 = vst [vmem:[%s413_s16] sm:$0x1] %v376_v0  ;;  %s422_s22 = scalar_lea.vmem %s440_s2, %s446_s9 }
  0x11   : > { %182 = vst [vmem:[%s422_s22] sm:$0x1] %v376_v0  ;;  %v183_v1 = vld [vmem:[%s169_s19] sm:$0xff]  ;;  %v184_v2 = vld [vmem:[%s169_s19 + $0x8] sm:$0xff]  ;;  %v185_v3 = vld [vmem:[%s169_s19 + $0x10] sm:$0xff] }
  0x12   : > { %v186_v4 = vld [vmem:[%s169_s19 + $0x18] sm:$0xff]  ;;  %v192_v5 = vadd.f32 %v184_v2, %v183_v1  ;;  %v208_v6 = vmul.f32 %v183_v1, %v183_v1  ;;  %v209_v7 = vmul.f32 %v184_v2, %v184_v2  ;;  %v210_v8 = vmul.f32 %v185_v3, %v185_v3  ;;  %v187_v9 = vld [vmem:[%s169_s19 + $0x20] sm:$0xff]  ;;  %v188_v13 = vld [vmem:[%s169_s19 + $0x28] sm:$0xff] }
  0x13   : > { %v211_v11 = vmul.f32 %v186_v4, %v186_v4  ;;  %v212_v15 = vmul.f32 %v187_v9, %v187_v9  ;;  %v189_v17 = vld [vmem:[%s169_s19 + $0x30] sm:$0xff]  ;;  %v213_v19 = vmul.f32 %v188_v13, %v188_v13  ;;  %v190_v21 = vld [vmem:[%s169_s19 + $0x38] sm:$0xff] }
  0x14   : > { %v193_v10 = vadd.f32 %v192_v5, %v185_v3  ;;  %v216_v12 = vadd.f32 %v209_v7, %v208_v6  ;;  %v214_v23 = vmul.f32 %v189_v17, %v189_v17  ;;  %v215_v26 = vmul.f32 %v190_v21, %v190_v21 }
  0x16   : > { %v194_v14 = vadd.f32 %v193_v10, %v186_v4  ;;  %v217_v16 = vadd.f32 %v216_v12, %v210_v8 }
  0x17   : > { %v191_v40 = vld [vmem:[%s413_s16] sm:$0x1] }
  0x18   : > { %v195_v18 = vadd.f32 %v194_v14, %v187_v9  ;;  %v218_v20 = vadd.f32 %v217_v16, %v211_v11  ;;  %v207_v43 = vld [vmem:[%s422_s22] sm:$0x1] }
  0x1a   : > { %v196_v22 = vadd.f32 %v195_v18, %v188_v13  ;;  %v219_v24 = vadd.f32 %v218_v20, %v212_v15 }
  0x1c   : > { %v197_v25 = vadd.f32 %v196_v22, %v189_v17  ;;  %v220_v27 = vadd.f32 %v219_v24, %v213_v19 }
  0x1e   : > { %v198_v28 = vadd.f32 %v197_v25, %v190_v21  ;;  %v221_v29 = vadd.f32 %v220_v27, %v214_v23 }
  0x20   : > { %v199_v30 = vrot.slane %v198_v28, 4  ;;  %v222_v31 = vadd.f32 %v221_v29, %v215_v26 }
  0x22   : > { %v200_v32 = vadd.f32 %v199_v30, %v198_v28  ;;  %v223_v33 = vrot.slane %v222_v31, 4 }
  0x24   : > { %v201_v34 = vrot.slane %v200_v32, 2  ;;  %v224_v35 = vadd.f32 %v223_v33, %v222_v31 }
  0x26   : > { %v202_v36 = vadd.f32 %v201_v34, %v200_v32  ;;  %v225_v37 = vrot.slane %v224_v35, 2 }
  0x28   : > { %v203_v38 = vrot.slane %v202_v36, 1  ;;  %v226_v39 = vadd.f32 %v225_v37, %v224_v35 }
  0x2a   : > { %v204_v41 = vadd.f32 %v203_v38, %v202_v36  ;;  %v227_v42 = vrot.slane %v226_v39, 1 }
  0x2c   : > { %v205_v44 = vadd.f32 %v204_v41, %v191_v40  ;;  %v228_v45 = vadd.f32 %v227_v42, %v226_v39 }
  0x2e   : > { %206 = vst [vmem:[%s413_s16] sm:$0x1] %v205_v44  ;;  %v229_v46 = vadd.f32 %v228_v45, %v207_v43 }
  0x30   : > { %230 = vst [vmem:[%s422_s22] sm:$0x1] %v229_v46 }
  0x31 PF: > { %s13_s11 = sadd.s32 1, %s374_s11   ;;  %s441_s9 = smov %s370_s10 }
  0x32   : > { %p10_p5 = scmp.ge.s32.totalorder %s13_s11, 4   ;;  %s442_s10 = smov %s444_s12 }
  0x34   :  { %12 = sbr.rel (!%p10_p5) target bundleno = 2 (0x2), region = 70 }

// kernel: attn_block.5
= control target key start
LH: loop header
LB: loop body
LE: loop exit
PB: predicated region body
PF: predicated region fallthrough
CT: control target
= control target key end

     0   :  { %s1318_s21 = smov 0   ;;  %s1320_s22 = smov 0   ;;  %s1432_s0 = inlined_call_operand.vmem [shape: bf16[2,64,128], index: 0, kind: input, shape index: {}]   ;;  %s1433_s1 = inlined_call_operand.vmem [shape: bf16[2,128,64], index: 1, kind: input, shape index: {}]   ;;  %s1434_s2 = inlined_call_operand.vmem [shape: bf16[2,64,128], index: 2, kind: input, shape index: {}]   ;;  %s1435_s3 = inlined_call_operand.vmem [shape: f32[2,64,128], index: 3, kind: input, shape index: {}]   ;;  %s1436_s4 = inlined_call_operand.vmem [shape: bf16[128,128], index: 4, kind: input, shape index: {}]   ;;  %s1437_s5 = inlined_call_operand.vmem [shape: f32[1,128], index: 5, kind: input, shape index: {}]   ;;  %s1438_s6 = inlined_call_operand.vmem [shape: f32[2,64,128], index: 6, kind: output, shape index: {}]  }
   0x1   :  { %s1322_s23 = smov 0  }
   0x2 LB: > { %s28_s24 = sadd.s32 1, %s1276_s22  ;;  %p1040_p0 = scmp.ge.s32.totalorder %s1280_s23, 1  ;;  %s1280_s23 = sphi %s1322_s23, %s16_s23   ;;  %s1276_s22 = sphi %s1320_s22, %s1440_s22   ;;  %s1272_s21 = sphi %s1318_s21, %s1439_s21  }
   0x3   : > { %p30_p1 = scmp.ge.s32.totalorder %s28_s24, 2  ;;  %p270_p2 = scmp.lt.s32.totalorder %s1280_s23, 3 }
   0x5   : > { %s1442_s24 = smov (%p30_p1, %s28_s24), 0  ;;  %p271_p3 = pnand %p1040_p0, %p270_p2 }
   0x6   : > { %p328_p4 = scmp.lt.s32.totalorder (!%p271_p3), %s1272_s21, 1  ;;  %vm529_vm0 = vcmask (!%p271_p3), 523264   ;;  %v1282_v60 = vmov (!%p271_p3), 64   ;;  %v1226_v61 = vld [vmem:[%s1436_s4] sm:$0xff] (!%p271_p3)   ;;  %v1227_v62 = vld [vmem:[%s1436_s4 + $0x8] sm:$0xff] (!%p271_p3)   ;;  %v1228_v63 = vld [vmem:[%s1436_s4 + $0x10] sm:$0xff] (!%p271_p3)  }
   0x7   : > { %274 = sbr.rel (%p271_p3) target bundleno = 1028 (0x404), region = 44  ;;  %1209 = vset.pattern.permute.xlu1 (!%p271_p3), %v1282_v60  ;;  %1208 = vset.pattern.permute.xlu0 (!%p271_p3), %v1282_v60 }
   0xe   : > { %s1444_s21 = smov (!%p328_p4, %s1272_s21), 1 }
   0xf   : > { %s1339_s25 = sshll.u32 %s1444_s21, 6  ;;  %s1082_s29 = sshll.u32 %s1444_s21, 5 }
  0x10   : > { %s341_s28 = scalar_lea.vmem %s1433_s1, %s1339_s25  ;;  %s335_s8 = scalar_lea.vmem %s1432_s0, %s1082_s29 }
  0x11   : > { %v1210_v0 = vld [vmem:[%s341_s28] sm:$0xff]   ;;  %v1211_v1 = vld [vmem:[%s341_s28 + $0x8] sm:$0xff]   ;;  %v1212_v2 = vld [vmem:[%s341_s28 + $0x10] sm:$0xff]   ;;  %s346_s11 = scalar_lea.vmem %s1434_s2, %s1082_s29  ;;  %s1396_s10 = scalar_lea.vmem %s1435_s3, %s1339_s25 }
  0x12   : > { %1119 = vmatprep.subr.bf16.mxu0 %v1210_v0  ;;  %v1213_v3 = vld [vmem:[%s341_s28 + $0x18] sm:$0xff]   ;;  %v1218_v4 = vld [vmem:[%s335_s8] sm:$0xff]   ;;  %v1215_v6 = vld [vmem:[%s341_s28 + $0x28] sm:$0xff]   ;;  %s1407_s15 = scalar_lea.vmem %s1438_s6, %s1339_s25 }
  0x13   : > { %1120 = vmatpush3.bf16.msra.mxu0 %v1210_v0  ;;  %1135 = vmatprep.mubr.bf16.mxu0 %v1218_v4  ;;  %v1214_v5 = vld [vmem:[%s341_s28 + $0x20] sm:$0xff]   ;;  %v1216_v7 = vld [vmem:[%s341_s28 + $0x30] sm:$0xff]   ;;  %v1217_v8 = vld [vmem:[%s341_s28 + $0x38] sm:$0xff]  }
  0x14   : > { %1121 = vmatprep.subr.bf16.mxu0 %v1211_v1  ;;  %v1219_v9 = vld [vmem:[%s335_s8 + $0x8] sm:$0xff]   ;;  %v1220_v10 = vld [vmem:[%s335_s8 + $0x10] sm:$0xff]   ;;  %v1221_v11 = vld [vmem:[%s335_s8 + $0x18] sm:$0xff]  }
  0x15   : > { %v1222_v28 = vld [vmem:[%s346_s11] sm:$0xff]   ;;  %v1223_v29 = vld [vmem:[%s346_s11 + $0x8] sm:$0xff]   ;;  %v1224_v30 = vld [vmem:[%s346_s11 + $0x10] sm:$0xff]  }
  0x16   : > { %1143 = vmatprep.subr.bf16.mxu1 %v1222_v28  ;;  %v1225_v31 = vld [vmem:[%s346_s11 + $0x18] sm:$0xff]  }
  0x17   : > { %1122 = vmatpush3.bf16.msra.mxu0 %v1211_v1  ;;  %1144 = vmatpush3.bf16.msra.mxu1 %v1222_v28  ;;  %v1229_v0 = vld [vmem:[%s1436_s4 + $0x18] sm:$0xff]   ;;  %v1230_v1 = vld [vmem:[%s1436_s4 + $0x20] sm:$0xff]  }
  0x18   : > { %1123 = vmatprep.subr.bf16.mxu0 %v1212_v2  ;;  %1145 = vmatprep.subr.bf16.mxu1 %v1223_v29 }
  0x1b   : > { %1124 = vmatpush3.bf16.msra.mxu0 %v1212_v2  ;;  %1146 = vmatpush3.bf16.msra.mxu1 %v1223_v29 }
  0x1c   : > { %1125 = vmatprep.subr.bf16.mxu0 %v1213_v3  ;;  %1147 = vmatprep.subr.bf16.mxu1 %v1224_v30 }
  0x1f   : > { %1126 = vmatpush3.bf16.msra.mxu0 %v1213_v3  ;;  %1148 = vmatpush3.bf16.msra.mxu1 %v1224_v30 }
  0x20   : > { %1127 = vmatprep.subr.bf16.mxu0 %v1214_v5  ;;  %1149 = vmatprep.subr.bf16.mxu1 %v1225_v31 }
  0x23   : > { %1128 = vmatpush3.bf16.msra.mxu0 %v1214_v5  ;;  %1150 = vmatpush3.bf16.msra.mxu1 %v1225_v31 }
  0x24   : > { %1129 = vmatprep.subr.bf16.mxu0 %v1215_v6  ;;  %1159 = vmatprep.subr.bf16.mxu1 %v1226_v61 }
  0x27   : > { %1130 = vmatpush3.bf16.msra.mxu0 %v1215_v6 }
  0x28   : > { %1131 = vmatprep.subr.bf16.mxu0 %v1216_v7 }
  0x2b   : > { %1132 = vmatpush3.bf16.msra.mxu0 %v1216_v7 }
  0x2c   : > { %1133 = vmatprep.subr.bf16.mxu0 %v1217_v8 }
  0x2f   : > { %1134 = vmatpush3.bf16.msra.mxu0 %v1217_v8 }
  0x32   : > { %1136 = vmatmul.mubr.bf16.vlgmr.msra.gmra.mrb[0].mxu0 %v1219_v9 }
  0x33   : > { %1139 = vmatprep.mubr.bf16.mxu0 %v1220_v10  ;;  %v1231_v10 = vld [vmem:[%s1436_s4 + $0x28] sm:$0xff]  }
  0x3a   : > { %1140 = vmatmul.mubr.bf16.gmra.mrb[4].mxu0 %v1221_v11 }
 0x105   : > { %v1137_v12 = vpop.f32.mrb[0].mxu0 }
 0x106   : > { %v498_v13 = vpop.f32.mrb[1].mxu0  ;;  %v536_v14 = vsel %vm529_vm0, %v1137_v12, -inf }
 0x107   : > { %537 = vmax.xlane.f32.xlu1 %v536_v14  ;;  %v1138_v15 = vpop.f32.mrb[2].mxu0  ;;  %v530_v16 = vsel %vm529_vm0, %v498_v13, -inf  ;;  %v1232_v14 = vld [vmem:[%s1436_s4 + $0x30] sm:$0xff]  }
 0x108   : > { %531 = vmax.xlane.f32.xlu0 %v530_v16  ;;  %v501_v17 = vpop.f32.mrb[3].mxu0  ;;  %v539_v18 = vsel %vm529_vm0, %v1138_v15, -inf  ;;  %v1233_v16 = vld [vmem:[%s1436_s4 + $0x38] sm:$0xff]  }
 0x109   : > { %v533_v19 = vsel %vm529_vm0, %v501_v17, -inf }
 0x10b   : > { %540 = vmax.xlane.f32.xlu1 %v539_v18 }
 0x10c   : > { %534 = vmax.xlane.f32.xlu0 %v533_v19 }
 0x10d   : > { %v1141_v20 = vpop.f32.mrb[4].mxu0 }
 0x10e   : > { %v514_v21 = vpop.f32.mrb[5].mxu0  ;;  %v548_v26 = vsel %vm529_vm0, %v1141_v20, -inf }
 0x10f   : > { %v1142_v22 = vpop.f32.mrb[6].mxu0  ;;  %v542_v23 = vsel %vm529_vm0, %v514_v21, -inf }
 0x110   : > { %543 = vmax.xlane.f32.xlu0 %v542_v23  ;;  %v517_v24 = vpop.f32.mrb[7].mxu0  ;;  %v551_v27 = vsel %vm529_vm0, %v1142_v22, -inf }
 0x111   : > { %v545_v25 = vsel %vm529_vm0, %v517_v24, -inf }
 0x112   : > { %546 = vmax.xlane.f32.xlu1 %v545_v25 }
 0x114   : > { %549 = vmax.xlane.f32.xlu0 %v548_v26 }
 0x116   : > { %552 = vmax.xlane.f32.xlu1 %v551_v27 }
 0x194   : > { %v538_v32 = vpop.xlane.xlu1 %537 }
 0x195   : > { %v532_v33 = vpop.xlane.xlu0 %531  ;;  %v556_v35 = vsub.f32 %v1137_v12, %v538_v32 }
 0x196   : > { %v554_v38 = vsub.f32 %v498_v13, %v532_v33 }
 0x198   : > { %v541_v34 = vpop.xlane.xlu1 %540 }
 0x199   : > { %v557_v36 = vsub.f32 %v1138_v15, %v541_v34  ;;  %v535_v37 = vpop.xlane.xlu0 %534 }
 0x19a   : > { %v555_v39 = vsub.f32 %v501_v17, %v535_v37 }
 0x19b   : > { %v563_v40 = vpack.c.bf16 %v557_v36, %v556_v35 }
 0x19c   : > { %v562_v41 = vpack.c.bf16 %v555_v39, %v554_v38 }
 0x19d   : > { %v570_v42 = vmul.bf16 1069105081, %v563_v40  ;;  %v544_v43 = vpop.xlane.xlu0 %543 }
 0x19e   : > { %v567_v44 = vmul.bf16 1069105081, %v562_v41  ;;  %v558_v46 = vsub.f32 %v514_v21, %v544_v43  ;;  %v1071_v41 = vld [vmem:[%s1437_s5] ss:$0 sm:$0xff]  ;;  %v885_v43 = vld [vmem:[%s1396_s10 + $0x10] sm:$0xff] }
 0x19f   : > { %v547_v45 = vpop.xlane.xlu1 %546 }
 0x1a0   : > { %1234 = vpow.bf16 %v567_v44  ;;  %v559_v47 = vsub.f32 %v517_v24, %v547_v45 }
 0x1a1   : > { %1236 = vpow.bf16 %v570_v42  ;;  %v550_v48 = vpop.xlane.xlu0 %549 }
 0x1a2   : > { %v564_v49 = vpack.c.bf16 %v559_v47, %v558_v46  ;;  %v560_v52 = vsub.f32 %v1141_v20, %v550_v48  ;;  %v883_v46 = vld [vmem:[%s1396_s10] sm:$0xff] }
 0x1a3   : > { %v553_v50 = vpop.xlane.xlu1 %552 }
 0x1a4   : > { %v573_v51 = vmul.bf16 1069105081, %v564_v49  ;;  %v561_v53 = vsub.f32 %v1142_v22, %v553_v50  ;;  %v886_v49 = vld [vmem:[%s1396_s10 + $0x18] sm:$0xff] }
 0x1a6   : > { %1238 = vpow.bf16 %v573_v51  ;;  %v565_v54 = vpack.c.bf16 %v561_v53, %v560_v52  ;;  %v884_v53 = vld [vmem:[%s1396_s10 + $0x8] sm:$0xff] }
 0x1a8   : > { %v576_v55 = vmul.bf16 1069105081, %v565_v54 }
 0x1aa   : > { %1240 = vpow.bf16 %v576_v55 }
 0x1ab   : > { %v1235_v56 = vpop.eup %1234 }
 0x1ac   : > { %v1237_v57 = vpop.eup %1236  ;;  %1151 = vmatprep.mubr.msk.bf16.mxu1 %vm529_vm0, %v1235_v56 }
 0x1ad   : > { %1152 = vmatmul.mubr.msk.bf16.vlgmr.msra.gmra.mrb[0].mxu1 %vm529_vm0, %v1237_v57 }
 0x1ae   : > { %1160 = vmatpush3.bf16.msra.mxu1 %v1226_v61 }
 0x1af   : > { %1161 = vmatprep.subr.bf16.mxu1 %v1227_v62 }
 0x1b1   : > { %v1239_v58 = vpop.eup %1238 }
 0x1b2   : > { %1155 = vmatprep.mubr.msk.bf16.mxu1 %vm529_vm0, %v1239_v58  ;;  %1162 = vmatpush3.bf16.msra.mxu1 %v1227_v62  ;;  %v887_v62 = vld [vmem:[%s1396_s10 + $0x20] sm:$0xff] }
 0x1b3   : > { %1163 = vmatprep.subr.bf16.mxu1 %v1228_v63 }
 0x1b5   : > { %v1241_v59 = vpop.eup %1240 }
 0x1b6   : > { %1156 = vmatmul.mubr.msk.bf16.gmra.mrb[4].mxu1 %vm529_vm0, %v1241_v59  ;;  %v889_v59 = vld [vmem:[%s1396_s10 + $0x30] sm:$0xff] }
 0x1b7   : > { %1164 = vmatpush3.bf16.msra.mxu1 %v1228_v63 }
 0x1b8   : > { %1165 = vmatprep.subr.bf16.mxu1 %v1229_v0 }
 0x1bb   : > { %1166 = vmatpush3.bf16.msra.mxu1 %v1229_v0 }
 0x1bc   : > { %1167 = vmatprep.subr.bf16.mxu1 %v1230_v1 }
 0x1bf   : > { %1168 = vmatpush3.bf16.msra.mxu1 %v1230_v1  ;;  %v890_v1 = vld [vmem:[%s1396_s10 + $0x38] sm:$0xff] }
 0x1c0   : > { %1169 = vmatprep.subr.bf16.mxu1 %v1231_v10 }
 0x1c3   : > { %1170 = vmatpush3.bf16.msra.mxu1 %v1231_v10 }
 0x1c4   : > { %1171 = vmatprep.subr.bf16.mxu1 %v1232_v14 }
 0x1c7   : > { %1172 = vmatpush3.bf16.msra.mxu1 %v1232_v14 }
 0x1c8   : > { %1173 = vmatprep.subr.bf16.mxu1 %v1233_v16 }
 0x1cb   : > { %1174 = vmatpush3.bf16.msra.mxu1 %v1233_v16 }
 0x280   : > { %v1153_v2 = vpop.f32.mrb[0].mxu1 }
 0x281   : > { %1242 = vrcp.f32 %v1153_v2  ;;  %v656_v3 = vpop.f32.mrb[1].mxu1 }
 0x282   : > { %1244 = vrcp.f32 %v656_v3  ;;  %v1154_v4 = vpop.f32.mrb[2].mxu1 }
 0x283   : > { %v659_v5 = vpop.f32.mrb[3].mxu1  ;;  %1246 = vrcp.f32 %v1154_v4 }
 0x284   : > { %1248 = vrcp.f32 %v659_v5 }
 0x289   : > { %v1157_v6 = vpop.f32.mrb[4].mxu1 }
 0x28a   : > { %v672_v7 = vpop.f32.mrb[5].mxu1  ;;  %1250 = vrcp.f32 %v1157_v6 }
 0x28b   : > { %v1243_v8 = vpop.eup %1242  ;;  %v1158_v9 = vpop.f32.mrb[6].mxu1  ;;  %1252 = vrcp.f32 %v672_v7 }
 0x28c   : > { %v1245_v11 = vpop.eup %1244  ;;  %707 = vperm.xlu1 %1209, %v1243_v8   ;;  %v675_v12 = vpop.f32.mrb[7].mxu1 }
 0x28d   : > { %697 = vperm.xlu0 %1208, %v1245_v11   ;;  %v1247_v13 = vpop.eup %1246  ;;  %1254 = vrcp.f32 %v675_v12 }
 0x28e   : > { %v1249_v15 = vpop.eup %1248  ;;  %1256 = vrcp.f32 %v1158_v9 }
 0x290   : > { %712 = vperm.xlu1 %1209, %v1247_v13  }
 0x294   : > { %702 = vperm.xlu1 %1209, %v1249_v15   ;;  %v1251_v17 = vpop.eup %1250 }
 0x295   : > { %v1253_v18 = vpop.eup %1252 }
 0x297   : > { %v1255_v19 = vpop.eup %1254 }
 0x298   : > { %727 = vperm.xlu1 %1209, %v1251_v17   ;;  %v1257_v20 = vpop.eup %1256 }
 0x29c   : > { %717 = vperm.xlu1 %1209, %v1253_v18  }
 0x2a0   : > { %722 = vperm.xlu1 %1209, %v1255_v19  }
 0x2a4   : > { %732 = vperm.xlu1 %1209, %v1257_v20  }
 0x30b   : > { %v708_v21 = vpop.permute.xlu1 %707 }
 0x30c   : > { %v737_v23 = vmul.f32 %v1153_v2, %v708_v21  ;;  %v698_v25 = vpop.permute.xlu0 %697 }
 0x30d   : > { %v735_v28 = vmul.f32 %v698_v25, %v656_v3 }
 0x30f   : > { %v713_v22 = vpop.permute.xlu1 %712 }
 0x310   : > { %v738_v24 = vmul.f32 %v1154_v4, %v713_v22 }
 0x312   : > { %v744_v26 = vpack.c.bf16 %v738_v24, %v737_v23 }
 0x313   : > { %v703_v27 = vpop.permute.xlu1 %702 }
 0x314   : > { %v736_v29 = vmul.f32 %v703_v27, %v659_v5  ;;  %v888_v5 = vld [vmem:[%s1396_s10 + $0x28] sm:$0xff] }
 0x316   : > { %v743_v30 = vpack.c.bf16 %v736_v29, %v735_v28 }
 0x317   : > { %v728_v31 = vpop.permute.xlu1 %727 }
 0x318   : > { %1175 = vmatprep.mubr.bf16.mxu1 %v743_v30  ;;  %v741_v38 = vmul.f32 %v1157_v6, %v728_v31 }
 0x319   : > { %1176 = vmatmul.mubr.bf16.vlgmr.msra.gmra.mrb[8].mxu1 %v744_v26 }
 0x31b   : > { %v718_v32 = vpop.permute.xlu1 %717 }
 0x31c   : > { %v739_v34 = vmul.f32 %v718_v32, %v672_v7 }
 0x31f   : > { %v723_v33 = vpop.permute.xlu1 %722 }
 0x320   : > { %v740_v35 = vmul.f32 %v723_v33, %v675_v12 }
 0x322   : > { %v745_v36 = vpack.c.bf16 %v740_v35, %v739_v34 }
 0x323   : > { %v733_v37 = vpop.permute.xlu1 %732 }
 0x324   : > { %v742_v39 = vmul.f32 %v1158_v9, %v733_v37  ;;  %1179 = vmatprep.mubr.bf16.mxu1 %v745_v36 }
 0x326   : > { %v746_v40 = vpack.c.bf16 %v742_v39, %v741_v38 }
 0x328   : > { %1180 = vmatmul.mubr.bf16.gmra.mrb[12].mxu1 %v746_v40 }
 0x3ec   : > { %v1177_v42 = vpop.f32.mrb[8].mxu1 }
 0x3ed   : > { %v861_v44 = vadd.f32 %v1177_v42, %v1071_v41  ;;  %v852_v45 = vpop.f32.mrb[9].mxu1 }
 0x3ee   : > { %v853_v47 = vadd.f32 %v1071_v41, %v852_v45  ;;  %v1178_v48 = vpop.f32.mrb[10].mxu1 }
 0x3ef   : > { %v893_v50 = vadd.f32 %v885_v43, %v861_v44  ;;  %v864_v51 = vadd.f32 %v1178_v48, %v1071_v41  ;;  %v855_v52 = vpop.f32.mrb[11].mxu1 }
 0x3f0   : > { %v891_v54 = vadd.f32 %v883_v46, %v853_v47  ;;  %v856_v55 = vadd.f32 %v1071_v41, %v855_v52 }
 0x3f1   : > { %901 = vst [vmem:[%s1407_s15 + $0x10] sm:$0xff] %v893_v50  ;;  %v894_v56 = vadd.f32 %v886_v49, %v864_v51 }
 0x3f2   : > { %899 = vst [vmem:[%s1407_s15] sm:$0xff] %v891_v54  ;;  %v892_v57 = vadd.f32 %v884_v53, %v856_v55 }
 0x3f3   : > { %902 = vst [vmem:[%s1407_s15 + $0x18] sm:$0xff] %v894_v56 }
 0x3f4   : > { %900 = vst [vmem:[%s1407_s15 + $0x8] sm:$0xff] %v892_v57 }
 0x3fb   : > { %v1181_v58 = vpop.f32.mrb[12].mxu1 }
 0x3fc   : > { %v877_v60 = vadd.f32 %v1181_v58, %v1071_v41  ;;  %v868_v61 = vpop.f32.mrb[13].mxu1 }
 0x3fd   : > { %v869_v63 = vadd.f32 %v1071_v41, %v868_v61  ;;  %v1182_v0 = vpop.f32.mrb[14].mxu1 }
 0x3fe   : > { %v897_v2 = vadd.f32 %v889_v59, %v877_v60  ;;  %v880_v3 = vadd.f32 %v1182_v0, %v1071_v41  ;;  %v871_v4 = vpop.f32.mrb[15].mxu1 }
 0x3ff   : > { %v895_v6 = vadd.f32 %v887_v62, %v869_v63  ;;  %v872_v7 = vadd.f32 %v1071_v41, %v871_v4 }
 0x400   : > { %905 = vst [vmem:[%s1407_s15 + $0x30] sm:$0xff] %v897_v2  ;;  %v898_v8 = vadd.f32 %v890_v1, %v880_v3 }
 0x401   : > { %903 = vst [vmem:[%s1407_s15 + $0x20] sm:$0xff] %v895_v6  ;;  %v896_v9 = vadd.f32 %v888_v5, %v872_v7 }
 0x402   : > { %906 = vst [vmem:[%s1407_s15 + $0x38] sm:$0xff] %v898_v8 }
 0x403   : > { %904 = vst [vmem:[%s1407_s15 + $0x28] sm:$0xff] %v896_v9 }
 0x404 PF: > { %s16_s23 = sadd.s32 1, %s1280_s23   ;;  %s1439_s21 = smov %s1276_s22 }
 0x405   : > { %p13_p5 = scmp.ge.s32.totalorder %s16_s23, 4   ;;  %s1440_s22 = smov %s1442_s24 }
 0x407   :  { %15 = sbr.rel (!%p13_p5) target bundleno = 2 (0x2), region = 83 }

// kernel: attn_block.4
= control target key start
LH: loop header
LB: loop body
LE: loop exit
PB: predicated region body
PF: predicated region fallthrough
CT: control target
= control target key end

     0   :  { %s1524_s30 = smov 0   ;;  %s1526_s10 = smov 0   ;;  %s1738_s0 = inlined_call_operand.vmem [shape: f32[2,64,128], index: 0, kind: input, shape index: {}]   ;;  %s1739_s1 = inlined_call_operand.vmem [shape: f32[2,1,128], index: 1, kind: input, shape index: {}]   ;;  %s1740_s2 = inlined_call_operand.vmem [shape: f32[2,1,128], index: 2, kind: input, shape index: {}]   ;;  %s1741_s3 = inlined_call_operand.vmem [shape: f32[1,128], index: 3, kind: input, shape index: {}]   ;;  %s1742_s4 = inlined_call_operand.vmem [shape: f32[1,128], index: 4, kind: input, shape index: {}]   ;;  %s1743_s5 = inlined_call_operand.vmem [shape: bf16[128,384], index: 5, kind: input, shape index: {}]   ;;  %s1744_s6 = inlined_call_operand.vmem [shape: f32[1,384], index: 6, kind: input, shape index: {}]   ;;  %s1745_s7 = inlined_call_operand.vmem [shape: bf16[2,64,128], index: 7, kind: output, shape index: {0}]   ;;  %s1746_s8 = inlined_call_operand.vmem [shape: bf16[2,128,64], index: 8, kind: output, shape index: {1}]   ;;  %s1747_s9 = inlined_call_operand.vmem [shape: bf16[2,64,128], index: 9, kind: output, shape index: {2}]  }
   0x1   :  { %s1528_s11 = smov 0  }
   0x2 LB: > { %s32_s12 = sadd.s32 1, %s1467_s10  ;;  %p1206_p0 = scmp.ge.s32.totalorder %s1471_s11, 1  ;;  %s1471_s11 = sphi %s1528_s11, %s20_s11   ;;  %s1467_s10 = sphi %s1526_s10, %s1749_s10   ;;  %s1463_s30 = sphi %s1524_s30, %s1748_s30  }
   0x3   : > { %p34_p1 = scmp.ge.s32.totalorder %s32_s12, 2  ;;  %p333_p2 = scmp.lt.s32.totalorder %s1471_s11, 3 }
   0x5   : > { %s1751_s12 = smov (%p34_p1, %s32_s12), 0  ;;  %p334_p3 = pnand %p1206_p0, %p333_p2 }
   0x6   : > { %v1417_v0 = vld [vmem:[%s1743_s5 + $0x4] ss:$12 sps:$4 sm:$0xff] (!%p334_p3)   ;;  %p401_p4 = scmp.lt.s32.totalorder (!%p334_p3), %s1463_s30, 1  ;;  %v1419_v1 = vld [vmem:[%s1743_s5] ss:$12 sps:$4 sm:$0xff] (!%p334_p3)   ;;  %v1473_v2 = vmov (!%p334_p3), 0   ;;  %v461_v4 = vlaneseq (!%p334_p3) }
   0x7   : > { %337 = sbr.rel (%p334_p3) target bundleno = 446 (0x1be), region = 48  ;;  %701 = vmatprep.mubr.bf16.mxu0 (!%p334_p3), %v1473_v2  ;;  %669 = vmatprep.subr.bf16.mxu0 (!%p334_p3), %v1417_v0  ;;  %v1420_v3 = vld [vmem:[%s1743_s5 + $0x1c] ss:$12 sps:$4 sm:$0xff] (!%p334_p3)   ;;  %v1422_v5 = vld [vmem:[%s1743_s5 + $0x18] ss:$12 sps:$4 sm:$0xff] (!%p334_p3)   ;;  %vm943_vm0 = vcmask (!%p334_p3), 519168  }
   0x8   : > { %670 = vmatpush1.bf16.msra.mxu0 (!%p334_p3), %v1419_v1  ;;  %v1423_v6 = vld [vmem:[%s1743_s5 + $0x34] ss:$12 sps:$4 sm:$0xff] (!%p334_p3)   ;;  %v1560_v7 = vshrl.u32 (!%p334_p3), %v461_v4, 7  ;;  %v1425_v8 = vld [vmem:[%s1743_s5 + $0x30] ss:$12 sps:$4 sm:$0xff] (!%p334_p3)  }
   0x9   : > { %671 = vmatprep.subr.bf16.mxu0 (!%p334_p3), %v1420_v3  ;;  %v1426_v9 = vld [vmem:[%s1743_s5 + $0x4c] ss:$12 sps:$4 sm:$0xff] (!%p334_p3)   ;;  %v1428_v12 = vld [vmem:[%s1743_s5 + $0x48] ss:$12 sps:$4 sm:$0xff] (!%p334_p3)   ;;  %v446_v13 = vld [vmem:[%s1741_s3] sm:$0x1] (!%p334_p3) }
   0xa   : > { %v1585_v11 = vsub.s32 (!%p334_p3), 0, %v1560_v7  ;;  %v1429_v15 = vld [vmem:[%s1743_s5 + $0x64] ss:$12 sps:$4 sm:$0xff] (!%p334_p3)   ;;  %v448_v17 = vld [vmem:[%s1742_s4] sm:$0x1] (!%p334_p3)  ;;  %v532_v3 = vsub.s32 (!%p334_p3), 1, %v1560_v7 }
   0xb   : > { %v1431_v20 = vld [vmem:[%s1743_s5 + $0x60] ss:$12 sps:$4 sm:$0xff] (!%p334_p3)   ;;  %v1432_v21 = vld [vmem:[%s1743_s5 + $0x7c] ss:$12 sps:$4 sm:$0xff] (!%p334_p3)   ;;  %v1434_v29 = vld [vmem:[%s1743_s5 + $0x78] ss:$12 sps:$4 sm:$0xff] (!%p334_p3)  }
   0xc   : > { %672 = vmatpush1.bf16.msra.mxu0 (!%p334_p3), %v1422_v5  ;;  %v1441_v24 = vld [vmem:[%s1743_s5 + $0x8] ss:$12 sps:$4 sm:$0xff] (!%p334_p3)   ;;  %v1442_v28 = vld [vmem:[%s1743_s5 + $0x20] ss:$12 sps:$4 sm:$0xff] (!%p334_p3)   ;;  %v1443_v31 = vld [vmem:[%s1743_s5 + $0x38] ss:$12 sps:$4 sm:$0xff] (!%p334_p3)  }
   0xd   : > { %673 = vmatprep.subr.bf16.mxu0 (!%p334_p3), %v1423_v6  ;;  %1367 = vmatprep.subr.bf16.mxu1 (!%p334_p3), %v1441_v24  ;;  %v1435_v32 = vld [vmem:[%s1743_s5 + $0x94] ss:$12 sps:$4 sm:$0xff] (!%p334_p3)   ;;  %v1437_v36 = vld [vmem:[%s1743_s5 + $0x90] ss:$12 sps:$4 sm:$0xff] (!%p334_p3)   ;;  %v1438_v38 = vld [vmem:[%s1743_s5 + $0xac] ss:$12 sps:$4 sm:$0xff] (!%p334_p3)  }
   0xe   : > { %s1753_s30 = smov (!%p401_p4, %s1463_s30), 1  ;;  %1368 = vmatpush3.bf16.msra.mxu1 %v1441_v24  ;;  %v1444_v37 = vld [vmem:[%s1743_s5 + $0x50] ss:$12 sps:$4 sm:$0xff]   ;;  %v1440_v39 = vld [vmem:[%s1743_s5 + $0xa8] ss:$12 sps:$4 sm:$0xff]  }
   0xf   : > { %s1273_s25 = sshll.u32 %s1753_s30, 6  ;;  %s415_s28 = scalar_lea.vmem %s1740_s2, %s1753_s30  ;;  %1369 = vmatprep.subr.bf16.mxu1 %v1442_v28  ;;  %v1445_v42 = vld [vmem:[%s1743_s5 + $0x68] ss:$12 sps:$4 sm:$0xff]   ;;  %v1446_v45 = vld [vmem:[%s1743_s5 + $0x80] ss:$12 sps:$4 sm:$0xff]  }
  0x10   : > { %s412_s16 = scalar_lea.vmem %s1739_s1, %s1753_s30  ;;  %s1582_s19 = scalar_lea.vmem %s1738_s0, %s1273_s25  ;;  %v445_v10 = vld [vmem:[%s415_s28] sm:$0x1]  ;;  %674 = vmatpush1.bf16.msra.mxu0 %v1425_v8  ;;  %v1447_v50 = vld [vmem:[%s1743_s5 + $0x98] ss:$12 sps:$4 sm:$0xff]   ;;  %v1448_v54 = vld [vmem:[%s1743_s5 + $0xb0] ss:$12 sps:$4 sm:$0xff]  }
  0x11   : > { %v449_v14 = vld [vmem:[%s412_s16] sm:$0x1]  ;;  %675 = vmatprep.subr.bf16.mxu0 %v1426_v9  ;;  %v447_v16 = vmul.f32 %v446_v13, %v445_v10  ;;  %v453_v19 = vld [vmem:[%s1582_s19 + $0x8] sm:$0xff]  ;;  %v454_v40 = vld [vmem:[%s1582_s19 + $0x10] sm:$0xff]  ;;  %s1274_s13 = sshll.u32 %s1753_s30, 5  ;;  %s1695_s23 = scalar_lea.vmem %s1746_s8, %s1273_s25 }
  0x12   : > { %v452_v18 = vld [vmem:[%s1582_s19] sm:$0xff]  ;;  %1370 = vmatpush3.bf16.msra.mxu1 %v1442_v28  ;;  %v455_v41 = vld [vmem:[%s1582_s19 + $0x18] sm:$0xff]  ;;  %v457_v49 = vld [vmem:[%s1582_s19 + $0x28] sm:$0xff]  ;;  %s1678_s16 = scalar_lea.vmem %s1745_s7, %s1274_s13  ;;  %s442_s20 = scalar_lea.vmem %s1747_s9, %s1274_s13 }
  0x13   : > { %v450_v22 = vmul.f32 %v449_v14, %v447_v16  ;;  %v1608_v23 = vrot.slane %v447_v16, %v1585_v11  ;;  %1371 = vmatprep.subr.bf16.mxu1 %v1443_v31  ;;  %v456_v48 = vld [vmem:[%s1582_s19 + $0x20] sm:$0xff]  ;;  %v458_v57 = vld [vmem:[%s1582_s19 + $0x30] sm:$0xff]  ;;  %v459_v58 = vld [vmem:[%s1582_s19 + $0x38] sm:$0xff] }
  0x14   : > { %676 = vmatpush1.bf16.msra.mxu0 %v1428_v12  ;;  %v524_v1 = vld [vmem:[%s1744_s6] sm:$0x7] }
  0x15   : > { %677 = vmatprep.subr.bf16.mxu0 %v1429_v15  ;;  %v451_v25 = vsub.f32 %v448_v17, %v450_v22  ;;  %v466_v26 = vmul.f32 %v1608_v23, %v452_v18  ;;  %v467_v27 = vmul.f32 %v1608_v23, %v453_v19  ;;  %v468_v43 = vmul.f32 %v1608_v23, %v454_v40 }
  0x16   : > { %1372 = vmatpush3.bf16.msra.mxu1 %v1443_v31  ;;  %v469_v44 = vmul.f32 %v1608_v23, %v455_v41  ;;  %v470_v52 = vmul.f32 %v1608_v23, %v456_v48  ;;  %v471_v53 = vmul.f32 %v1608_v23, %v457_v49  ;;  %v472_v60 = vmul.f32 %v1608_v23, %v458_v57 }
  0x17   : > { %v478_v30 = vrot.slane %v451_v25, %v1585_v11  ;;  %1373 = vmatprep.subr.bf16.mxu1 %v1444_v37  ;;  %v473_v61 = vmul.f32 %v1608_v23, %v459_v58  ;;  %v529_v4 = vrot.slane %v524_v1, %v1585_v11  ;;  %v533_v5 = vrot.slane %v524_v1, %v532_v3 }
  0x18   : > { %678 = vmatpush1.bf16.msra.mxu0 %v1431_v20 }
  0x19   : > { %679 = vmatprep.subr.bf16.mxu0 %v1432_v21  ;;  %v480_v33 = vadd.f32 %v478_v30, %v466_v26  ;;  %v481_v34 = vadd.f32 %v478_v30, %v467_v27  ;;  %v482_v46 = vadd.f32 %v478_v30, %v468_v43  ;;  %v483_v47 = vadd.f32 %v478_v30, %v469_v44 }
  0x1a   : > { %1374 = vmatpush3.bf16.msra.mxu1 %v1444_v37  ;;  %v484_v55 = vadd.f32 %v478_v30, %v470_v52  ;;  %v485_v56 = vadd.f32 %v478_v30, %v471_v53  ;;  %v486_v62 = vadd.f32 %v478_v30, %v472_v60  ;;  %v487_v63 = vadd.f32 %v478_v30, %v473_v61 }
  0x1b   : > { %v488_v35 = vpack.c.bf16 %v481_v34, %v480_v33  ;;  %1375 = vmatprep.subr.bf16.mxu1 %v1445_v42  ;;  %v489_v51 = vpack.c.bf16 %v483_v47, %v482_v46 }
  0x1c   : > { %680 = vmatpush1.bf16.msra.mxu0 %v1434_v29  ;;  %v490_v59 = vpack.c.bf16 %v485_v56, %v484_v55  ;;  %v491_v0 = vpack.c.bf16 %v487_v63, %v486_v62 }
  0x1d   : > { %681 = vmatprep.subr.bf16.mxu0 %v1435_v32  ;;  %1383 = vmatprep.mubr.bf16.mxu1 %v488_v35 }
  0x1e   : > { %1376 = vmatpush3.bf16.msra.mxu1 %v1445_v42  ;;  %v536_v42 = vsub.s32 2, %v1560_v7 }
  0x1f   : > { %1377 = vmatprep.subr.bf16.mxu1 %v1446_v45 }
  0x20   : > { %682 = vmatpush1.bf16.msra.mxu0 %v1437_v36  ;;  %v537_v44 = vrot.slane %v524_v1, %v536_v42 }
  0x21   : > { %683 = vmatprep.subr.bf16.mxu0 %v1438_v38 }
  0x22   : > { %1378 = vmatpush3.bf16.msra.mxu1 %v1446_v45 }
  0x23   : > { %1379 = vmatprep.subr.bf16.mxu1 %v1447_v50 }
  0x24   : > { %684 = vmatpush1.bf16.msra.mxu0 %v1440_v39 }
  0x26   : > { %1380 = vmatpush3.bf16.msra.mxu1 %v1447_v50 }
  0x27   : > { %702 = vmatmul.mubr.bf16.vlgmr.msra.gmra.mrb[0].mxu0 %v488_v35  ;;  %1381 = vmatprep.subr.bf16.mxu1 %v1448_v54 }
  0x28   : > { %711 = vmatprep.mubr.bf16.mxu0 %v1473_v2 }
  0x2a   : > { %1382 = vmatpush3.bf16.msra.mxu1 %v1448_v54 }
  0x2d   : > { %1384 = vmatmul.mubr.bf16.vlgmr.msra.gmra.mrb[0].mxu1 %v489_v51 }
  0x2e   : > { %1387 = vmatprep.mubr.bf16.mxu1 %v490_v59 }
  0x2f   : > { %712 = vmatmul.mubr.bf16.gmra.mrb[4].mxu0 %v489_v51 }
  0x30   : > { %721 = vmatprep.mubr.bf16.mxu0 %v1473_v2 }
  0x35   : > { %1388 = vmatmul.mubr.bf16.gmra.mrb[4].mxu1 %v491_v0 }
  0x37   : > { %722 = vmatmul.mubr.bf16.gmra.mrb[8].mxu0 %v490_v59 }
  0x38   : > { %731 = vmatprep.mubr.bf16.mxu0 %v1473_v2 }
  0x3f   : > { %732 = vmatmul.mubr.bf16.gmra.mrb[12].mxu0 %v491_v0 }
  0xfa   : > { %v703_v6 = vpop.f32.mrb[0].mxu0 }
  0xfb   : > { %v704_v8 = vadd.f32 %v703_v6, %v529_v4  ;;  %v705_v9 = vpop.f32.mrb[1].mxu0 }
  0xfc   : > { %v707_v10 = vpop.f32.mrb[2].mxu0  ;;  %v706_v12 = vadd.f32 %v705_v9, %v533_v5 }
  0xfd   : > { %v708_v2 = vadd.f32 %v707_v10, %v529_v4  ;;  %v709_v13 = vpop.f32.mrb[3].mxu0 }
  0xfe   : > { %847 = vxpose.xlu0.b32.start [1/8] (short) %v706_v12, 128  ;;  %v710_v11 = vadd.f32 %v709_v13, %v533_v5 }
  0xff   : > { %v1312_v14 = vpack.c.bf16 %v708_v2, %v704_v8 }
 0x100   : > { %v1385_v43 = vpop.f32.mrb[0].mxu1 }
 0x101   : > { %1313 = vst [vmem:[%s1678_s16] sm:$0xff] %v1312_v14   ;;  %v776_v45 = vpop.f32.mrb[1].mxu1  ;;  %v785_v47 = vadd.f32 %v1385_v43, %v537_v44 }
 0x102   : > { %v713_v15 = vpop.f32.mrb[4].mxu0  ;;  %848 = vxpose.xlu0.b32.cont [2/8] (short) %v710_v11, 128  ;;  %v1386_v46 = vpop.f32.mrb[2].mxu1  ;;  %v777_v48 = vadd.f32 %v776_v45, %v537_v44 }
 0x103   : > { %v714_v16 = vadd.f32 %v713_v15, %v529_v4  ;;  %v715_v17 = vpop.f32.mrb[5].mxu0  ;;  %v788_v49 = vadd.f32 %v1386_v46, %v537_v44  ;;  %v779_v50 = vpop.f32.mrb[3].mxu1 }
 0x104   : > { %v716_v18 = vadd.f32 %v715_v17, %v533_v5  ;;  %v717_v19 = vpop.f32.mrb[6].mxu0  ;;  %v780_v51 = vadd.f32 %v779_v50, %v537_v44 }
 0x105   : > { %v718_v20 = vadd.f32 %v717_v19, %v529_v4  ;;  %v719_v21 = vpop.f32.mrb[7].mxu0  ;;  %v1337_v52 = vpack.c.bf16 %v788_v49, %v785_v47 }
 0x106   : > { %849 = vxpose.xlu0.b32.cont [3/8] (short) %v716_v18, 128  ;;  %v720_v23 = vadd.f32 %v719_v21, %v533_v5  ;;  %v1332_v53 = vpack.c.bf16 %v780_v51, %v777_v48 }
 0x107   : > { %v1317_v22 = vpack.c.bf16 %v718_v20, %v714_v16  ;;  %1352 = vst [vmem:[%s442_s20 + $0x8] sm:$0xff] %v1337_v52  }
 0x108   : > { %v1389_v54 = vpop.f32.mrb[4].mxu1  ;;  %1333 = vst [vmem:[%s442_s20] sm:$0xff] %v1332_v53  }
 0x109   : > { %1349 = vst [vmem:[%s1678_s16 + $0x8] sm:$0xff] %v1317_v22   ;;  %v801_v7 = vadd.f32 %v1389_v54, %v537_v44  ;;  %v792_v55 = vpop.f32.mrb[5].mxu1 }
 0x10a   : > { %v723_v24 = vpop.f32.mrb[8].mxu0  ;;  %850 = vxpose.xlu0.b32.cont [4/8] (short) %v720_v23, 128  ;;  %v1390_v56 = vpop.f32.mrb[6].mxu1  ;;  %v793_v57 = vadd.f32 %v792_v55, %v537_v44 }
 0x10b   : > { %v724_v25 = vadd.f32 %v723_v24, %v529_v4  ;;  %v725_v26 = vpop.f32.mrb[9].mxu0  ;;  %v804_v58 = vadd.f32 %v1390_v56, %v537_v44  ;;  %v795_v59 = vpop.f32.mrb[7].mxu1 }
 0x10c   : > { %v726_v27 = vadd.f32 %v725_v26, %v533_v5  ;;  %v727_v28 = vpop.f32.mrb[10].mxu0  ;;  %v796_v60 = vadd.f32 %v795_v59, %v537_v44 }
 0x10d   : > { %v728_v29 = vadd.f32 %v727_v28, %v529_v4  ;;  %v729_v30 = vpop.f32.mrb[11].mxu0  ;;  %v1347_v61 = vpack.c.bf16 %v804_v58, %v801_v7 }
 0x10e   : > { %851 = vxpose.xlu0.b32.cont [5/8] (short) %v726_v27, 128  ;;  %v730_v32 = vadd.f32 %v729_v30, %v533_v5  ;;  %v1342_v62 = vpack.c.bf16 %v796_v60, %v793_v57 }
 0x10f   : > { %v1322_v31 = vpack.c.bf16 %v728_v29, %v724_v25  ;;  %1354 = vst [vmem:[%s442_s20 + $0x18] sm:$0xff] %v1347_v61  }
 0x110   : > { %1353 = vst [vmem:[%s442_s20 + $0x10] sm:$0xff] %v1342_v62  }
 0x111   : > { %1350 = vst [vmem:[%s1678_s16 + $0x10] sm:$0xff] %v1322_v31  }
 0x112   : > { %v733_v33 = vpop.f32.mrb[12].mxu0  ;;  %852 = vxpose.xlu0.b32.cont [6/8] (short) %v730_v32, 128 }
 0x113   : > { %v734_v34 = vadd.f32 %v733_v33, %v529_v4  ;;  %v735_v35 = vpop.f32.mrb[13].mxu0 }
 0x114   : > { %v736_v36 = vadd.f32 %v735_v35, %v533_v5  ;;  %v737_v37 = vpop.f32.mrb[14].mxu0 }
 0x115   : > { %v738_v38 = vadd.f32 %v737_v37, %v529_v4  ;;  %v739_v39 = vpop.f32.mrb[15].mxu0 }
 0x116   : > { %853 = vxpose.xlu0.b32.cont [7/8] (short) %v736_v36, 128  ;;  %v740_v41 = vadd.f32 %v739_v39, %v533_v5 }
 0x117   : > { %v1327_v40 = vpack.c.bf16 %v738_v38, %v734_v34 }
 0x119   : > { %1351 = vst [vmem:[%s1678_s16 + $0x18] sm:$0xff] %v1327_v40  }
 0x11a   : > { %854 = vxpose.xlu0.b32.end [8/8] (short) %v740_v41, 128 }
 0x17e   : > { %v863_v63 = vpop.trf.xlu0 }
 0x17f   : > { %v1285_v0 = vpack.c.bf16 %v863_v63, %v863_v63 }
 0x181   : > { %944 = vst.msk [vmem:[%s1695_s23] sm:$0xf] %vm943_vm0, %v1285_v0 }
 0x182   : > { %v864_v1 = vpop.trf.xlu0 }
 0x183   : > { %v1286_v3 = vpack.c.bf16 %v864_v1, %v864_v1 }
 0x185   : > { %945 = vst.msk [vmem:[%s1695_s23 + $0x4] sm:$0xf] %vm943_vm0, %v1286_v3 }
 0x186   : > { %v865_v4 = vpop.trf.xlu0 }
 0x187   : > { %v1287_v5 = vpack.c.bf16 %v865_v4, %v865_v4 }
 0x189   : > { %946 = vst.msk [vmem:[%s1695_s23 + $0x8] sm:$0xf] %vm943_vm0, %v1287_v5 }
 0x18a   : > { %v866_v6 = vpop.trf.xlu0 }
 0x18b   : > { %v1288_v8 = vpack.c.bf16 %v866_v6, %v866_v6 }
 0x18d   : > { %947 = vst.msk [vmem:[%s1695_s23 + $0xc] sm:$0xf] %vm943_vm0, %v1288_v8 }
 0x18e   : > { %v867_v9 = vpop.trf.xlu0 }
 0x18f   : > { %v1289_v10 = vpack.c.bf16 %v867_v9, %v867_v9 }
 0x191   : > { %948 = vst.msk [vmem:[%s1695_s23 + $0x10] sm:$0xf] %vm943_vm0, %v1289_v10 }
 0x192   : > { %v868_v12 = vpop.trf.xlu0 }
 0x193   : > { %v1290_v2 = vpack.c.bf16 %v868_v12, %v868_v12 }
 0x195   : > { %949 = vst.msk [vmem:[%s1695_s23 + $0x14] sm:$0xf] %vm943_vm0, %v1290_v2 }
 0x196   : > { %v869_v13 = vpop.trf.xlu0 }
 0x197   : > { %v1291_v14 = vpack.c.bf16 %v869_v13, %v869_v13 }
 0x199   : > { %950 = vst.msk [vmem:[%s1695_s23 + $0x18] sm:$0xf] %vm943_vm0, %v1291_v14 }
 0x19a   : > { %v870_v11 = vpop.trf.xlu0 }
 0x19b   : > { %v1292_v15 = vpack.c.bf16 %v870_v11, %v870_v11 }
 0x19d   : > { %951 = vst.msk [vmem:[%s1695_s23 + $0x1c] sm:$0xf] %vm943_vm0, %v1292_v15 }
 0x19e   : > { %v871_v16 = vpop.trf.xlu0 }
 0x19f   : > { %v1293_v17 = vpack.c.bf16 %v871_v16, %v871_v16 }
 0x1a1   : > { %952 = vst.msk [vmem:[%s1695_s23 + $0x20] sm:$0xf] %vm943_vm0, %v1293_v17 }
 0x1a2   : > { %v872_v18 = vpop.trf.xlu0 }
 0x1a3   : > { %v1294_v19 = vpack.c.bf16 %v872_v18, %v872_v18 }
 0x1a5   : > { %953 = vst.msk [vmem:[%s1695_s23 + $0x24] sm:$0xf] %vm943_vm0, %v1294_v19 }
 0x1a6   : > { %v873_v20 = vpop.trf.xlu0 }
 0x1a7   : > { %v1295_v21 = vpack.c.bf16 %v873_v20, %v873_v20 }
 0x1a9   : > { %954 = vst.msk [vmem:[%s1695_s23 + $0x28] sm:$0xf] %vm943_vm0, %v1295_v21 }
 0x1aa   : > { %v874_v22 = vpop.trf.xlu0 }
 0x1ab   : > { %v1296_v23 = vpack.c.bf16 %v874_v22, %v874_v22 }
 0x1ad   : > { %955 = vst.msk [vmem:[%s1695_s23 + $0x2c] sm:$0xf] %vm943_vm0, %v1296_v23 }
 0x1ae   : > { %v875_v24 = vpop.trf.xlu0 }
 0x1af   : > { %v1297_v25 = vpack.c.bf16 %v875_v24, %v875_v24 }
 0x1b1   : > { %956 = vst.msk [vmem:[%s1695_s23 + $0x30] sm:$0xf] %vm943_vm0, %v1297_v25 }
 0x1b2   : > { %v876_v26 = vpop.trf.xlu0 }
 0x1b3   : > { %v1298_v27 = vpack.c.bf16 %v876_v26, %v876_v26 }
 0x1b5   : > { %957 = vst.msk [vmem:[%s1695_s23 + $0x34] sm:$0xf] %vm943_vm0, %v1298_v27 }
 0x1b6   : > { %v877_v28 = vpop.trf.xlu0 }
 0x1b7   : > { %v1299_v29 = vpack.c.bf16 %v877_v28, %v877_v28 }
 0x1b9   : > { %958 = vst.msk [vmem:[%s1695_s23 + $0x38] sm:$0xf] %vm943_vm0, %v1299_v29 }
 0x1ba   : > { %v878_v30 = vpop.trf.xlu0 }
 0x1bb   : > { %v1300_v31 = vpack.c.bf16 %v878_v30, %v878_v30 }
 0x1bd   : > { %959 = vst.msk [vmem:[%s1695_s23 + $0x3c] sm:$0xf] %vm943_vm0, %v1300_v31 }
 0x1be PF: > { %s20_s11 = sadd.s32 1, %s1471_s11   ;;  %s1748_s30 = smov %s1467_s10 }
 0x1bf   : > { %p17_p5 = scmp.ge.s32.totalorder %s20_s11, 4   ;;  %s1749_s10 = smov %s1751_s12 }
 0x1c1   :  { %19 = sbr.rel (!%p17_p5) target bundleno = 2 (0x2), region = 108 }

</bundles_post_ra>
